<compile_context>
chip_gen: v5e
topology: v5e:2x2
jax: 0.10.0
libtpu: 0.0.40
codegen_flags: <defaults>
</compile_context>

<pallas_src>
import functools
import math

import jax
import jax.numpy as jnp
from jax import lax
from jax.experimental import pallas as pl
from jax.experimental.pallas import tpu as pltpu

LN_EPS = 1e-12
_INV_SQRT2 = 0.7071067811865476
VMEM_LIMIT = 48 * 1024 * 1024   # above every default scoped limit, <= physical on all gens


def _pick_tile(dim, prefs):
    """Largest preferred tile that evenly divides dim, else the full dim."""
    for t in prefs:
        if dim % t == 0:
            return t
    return dim


def _row_tiling(M, prefs=(256, 512, 128)):
    """Row tile + padded row count.  Pads rows instead of whole-array fallback."""
    for t in prefs:
        if M % t == 0:
            return t, M
    if M < prefs[0]:
        tile = -(-M // 8) * 8            # round up to a sublane multiple, single block
        return tile, tile
    tile = prefs[0]
    return tile, -(-M // tile) * tile


def _pad_rows(x, Mp):
    M = x.shape[0]
    if Mp == M:
        return x
    return jnp.pad(x, ((0, Mp - M),) + ((0, 0),) * (x.ndim - 1))


# ---------------------------------------------------------------------------
# Generic row-tiled linear (weight resident, fetched once).  Used for the pooler.
# ---------------------------------------------------------------------------
def _linear_kernel(x_ref, w_ref, b_ref, o_ref, *, activation):
    x = x_ref[...].astype(jnp.bfloat16)
    y = jnp.dot(x, w_ref[...], preferred_element_type=jnp.float32) + b_ref[...]
    if activation == "gelu":
        y = 0.5 * y * (1.0 + lax.erf(y * _INV_SQRT2))
    elif activation == "tanh":
        y = jnp.tanh(y)
    o_ref[...] = y.astype(o_ref.dtype)


def linear(x, w, b, activation=None, out_dtype=jnp.float32):
    M, K = x.shape
    N = w.shape[1]
    tm, Mp = _row_tiling(M)
    xp = _pad_rows(x, Mp)
    out = pl.pallas_call(
        functools.partial(_linear_kernel, activation=activation),
        out_shape=jax.ShapeDtypeStruct((Mp, N), out_dtype),
        grid_spec=pltpu.PrefetchScalarGridSpec(
            num_scalar_prefetch=0,
            grid=(Mp // tm,),
            in_specs=[
                pl.BlockSpec((tm, K), lambda i: (i, 0)),
                pl.BlockSpec((K, N), lambda i: (0, 0)),    # block-invariant weight
                pl.BlockSpec((1, N), lambda i: (0, 0)),
            ],
            out_specs=pl.BlockSpec((tm, N), lambda i: (i, 0)),
        ),
        compiler_params=pltpu.CompilerParams(
            dimension_semantics=("parallel",), vmem_limit_bytes=VMEM_LIMIT),
    )(xp, w, b.reshape(1, N))
    return out[:M] if Mp != M else out


# ---------------------------------------------------------------------------
# Q/K/V projections: one kernel, three lane-dense [M, H] bf16 outputs.
# x is read from HBM once; wq/wk/wv are block-invariant (fetched once).
# ---------------------------------------------------------------------------
def _qkv_kernel(x_ref, wq_ref, wk_ref, wv_ref, bq_ref, bk_ref, bv_ref,
                q_ref, k_ref, v_ref):
    x = x_ref[...]                                           # [tm, H] bf16
    for w_ref, b_ref, o_ref in ((wq_ref, bq_ref, q_ref),
                                (wk_ref, bk_ref, k_ref),
                                (wv_ref, bv_ref, v_ref)):
        y = jnp.dot(x, w_ref[...], preferred_element_type=jnp.float32) + b_ref[...]
        o_ref[...] = y.astype(o_ref.dtype)


def qkv_proj(x, wq, wk, wv, bq, bk, bv):
    M, H = x.shape
    tm, Mp = _row_tiling(M)
    xp = _pad_rows(x, Mp)
    outs = pl.pallas_call(
        _qkv_kernel,
        out_shape=[jax.ShapeDtypeStruct((Mp, H), jnp.bfloat16) for _ in range(3)],
        grid_spec=pltpu.PrefetchScalarGridSpec(
            num_scalar_prefetch=0,
            grid=(Mp // tm,),
            in_specs=[
                pl.BlockSpec((tm, H), lambda i: (i, 0)),
                pl.BlockSpec((H, H), lambda i: (0, 0)),
                pl.BlockSpec((H, H), lambda i: (0, 0)),
                pl.BlockSpec((H, H), lambda i: (0, 0)),
                pl.BlockSpec((1, H), lambda i: (0, 0)),
                pl.BlockSpec((1, H), lambda i: (0, 0)),
                pl.BlockSpec((1, H), lambda i: (0, 0)),
            ],
            out_specs=[pl.BlockSpec((tm, H), lambda i: (i, 0)) for _ in range(3)],
        ),
        compiler_params=pltpu.CompilerParams(
            dimension_semantics=("parallel",), vmem_limit_bytes=VMEM_LIMIT),
    )(xp, wq, wk, wv, bq.reshape(1, H), bk.reshape(1, H), bv.reshape(1, H))
    q, k, v = outs
    if Mp != M:
        q, k, v = q[:M], k[:M], v[:M]
    return q, k, v


# ---------------------------------------------------------------------------
# Flash attention fused with output projection + residual + LayerNorm.
# q/k/v/res: [B, S, H] bf16; bias: [B, 1, S] f32.  Grid (B, q-blocks, kv-blocks)
# with online softmax per head in VMEM scratch.  The finalize projects each
# head's context through its w_o row-slice, giving a lane-dense [tq, H] store.
# 1/sqrt(dh) is pre-folded into w_q.
# ---------------------------------------------------------------------------
def _attn_out_ln_kernel(bias_ref, q_ref, k_ref, v_ref, res_ref,
                        wo_ref, bo_ref, g_ref, bt_ref, o_ref,
                        m_sc, l_sc, acc_sc, *, nH, dh):
    ki = pl.program_id(2)

    @pl.when(ki == 0)
    def _():
        m_sc[...] = jnp.full(m_sc.shape, -jnp.inf, jnp.float32)
        l_sc[...] = jnp.zeros(l_sc.shape, jnp.float32)
        acc_sc[...] = jnp.zeros(acc_sc.shape, jnp.float32)

    q = q_ref[0]                      # [tq, H] bf16 (scale folded into w_q)
    k = k_ref[0]                      # [tk, H] bf16
    v = v_ref[0]                      # [tk, H] bf16
    bias = bias_ref[0]                # [1, tk]  f32 additive mask

    for h in range(nH):               # static unroll over heads
        sl = slice(h * dh, (h + 1) * dh)
        s = lax.dot_general(q[:, sl], k[:, sl],
                            (((1,), (1,)), ((), ())),
                            preferred_element_type=jnp.float32)      # [tq, tk]
        s = s + bias
        m_prev = m_sc[h]
        m_new = jnp.maximum(m_prev, jnp.max(s, axis=-1, keepdims=True))
        alpha = jnp.exp(m_prev - m_new)
        p = jnp.exp(s - m_new)
        l_sc[h] = alpha * l_sc[h] + jnp.sum(p, axis=-1, keepdims=True)
        acc_sc[h] = alpha * acc_sc[h] + jnp.dot(
            p.astype(v.dtype), v[:, sl], preferred_element_type=jnp.float32)
        m_sc[h] = m_new

    @pl.when(ki == pl.num_programs(2) - 1)
    def _():
        y = None
        for h in range(nH):
            ctx = acc_sc[h] * pl.reciprocal(l_sc[h], approx=True)     # [tq, dh] f32
            contrib = jnp.dot(ctx.astype(jnp.bfloat16),
                              wo_ref[h * dh:(h + 1) * dh, :],
                              preferred_element_type=jnp.float32)     # [tq, H]
            y = contrib if y is None else y + contrib
        y = y + bo_ref[...] + res_ref[0].astype(jnp.float32)          # residual
        mean = jnp.mean(y, axis=-1, keepdims=True)
        var = jnp.mean(jnp.square(y - mean), axis=-1, keepdims=True)
        yn = (y - mean) * lax.rsqrt(var + LN_EPS)
        o_ref[0] = (yn * g_ref[...] + bt_ref[...]).astype(o_ref.dtype)


def attn_out_ln(q, k, v, bias, wo, bo, res, gamma, beta, nH):
    B, S, H = q.shape
    dh = H // nH
    tq = _pick_tile(S, (256, 128))
    tk = _pick_tile(S, (256, 128))
    kern = functools.partial(_attn_out_ln_kernel, nH=nH, dh=dh)
    return pl.pallas_call(
        kern,
        out_shape=jax.ShapeDtypeStruct((B, S, H), jnp.bfloat16),
        grid_spec=pltpu.PrefetchScalarGridSpec(
            num_scalar_prefetch=0,
            grid=(B, S // tq, S // tk),
            in_specs=[
                pl.BlockSpec((1, 1, tk), lambda b, qi, ki: (b, 0, ki)),
                pl.BlockSpec((1, tq, H), lambda b, qi, ki: (b, qi, 0)),
                pl.BlockSpec((1, tk, H), lambda b, qi, ki: (b, ki, 0)),
                pl.BlockSpec((1, tk, H), lambda b, qi, ki: (b, ki, 0)),
                pl.BlockSpec((1, tq, H), lambda b, qi, ki: (b, qi, 0)),
                pl.BlockSpec((H, H), lambda b, qi, ki: (0, 0)),
                pl.BlockSpec((1, H), lambda b, qi, ki: (0, 0)),
                pl.BlockSpec((1, H), lambda b, qi, ki: (0, 0)),
                pl.BlockSpec((1, H), lambda b, qi, ki: (0, 0)),
            ],
            out_specs=pl.BlockSpec((1, tq, H), lambda b, qi, ki: (b, qi, 0)),
            scratch_shapes=[
                pltpu.VMEM((nH, tq, 1), jnp.float32),    # running max m
                pltpu.VMEM((nH, tq, 1), jnp.float32),    # running denom l
                pltpu.VMEM((nH, tq, dh), jnp.float32),   # running acc
            ],
        ),
        compiler_params=pltpu.CompilerParams(
            dimension_semantics=("parallel", "parallel", "arbitrary"),
            vmem_limit_bytes=VMEM_LIMIT),
    )(bias, q, k, v, res, wo, bo.reshape(1, H), gamma.reshape(1, H), beta.reshape(1, H))


# ---------------------------------------------------------------------------
# Fused FFN: wi -> GELU -> wp -> +residual -> LayerNorm.
# Inner loop over I-chunks: the [tm, I] intermediate never exists whole; the
# [tm, H] accumulator lives in VMEM scratch.  Weights are block-invariant.
# ---------------------------------------------------------------------------
def _ffn_kernel(x_ref, wi_ref, bi_ref, wp_ref, bp_ref, g_ref, bt_ref, o_ref,
                acc_ref, *, n_chunks, tI):
    x = x_ref[...]                                            # [tm, H] bf16
    acc_ref[...] = jnp.zeros_like(acc_ref)
    for c in range(n_chunks):                                 # static chunk loop
        lo, hi = c * tI, (c + 1) * tI
        h = jnp.dot(x, wi_ref[:, lo:hi],
                    preferred_element_type=jnp.float32) + bi_ref[:, lo:hi]
        h = 0.5 * h * (1.0 + lax.erf(h * _INV_SQRT2))         # exact GELU (BERT)
        acc_ref[...] += jnp.dot(h.astype(jnp.bfloat16), wp_ref[lo:hi, :],
                                preferred_element_type=jnp.float32)
    y = acc_ref[...] + bp_ref[...] + x.astype(jnp.float32)    # residual
    mean = jnp.mean(y, axis=-1, keepdims=True)
    var = jnp.mean(jnp.square(y - mean), axis=-1, keepdims=True)
    yn = (y - mean) * lax.rsqrt(var + LN_EPS)
    o_ref[...] = (yn * g_ref[...] + bt_ref[...]).astype(o_ref.dtype)


def ffn_res_ln(x, wi, bi, wp, bp, gamma, beta):
    M, H = x.shape
    I = wi.shape[1]
    tm, Mp = _row_tiling(M, prefs=(128, 256, 512))   # smaller row tile: VMEM headroom (v7x)
    tI = _pick_tile(I, (512, 256, 128))
    xp = _pad_rows(x, Mp)
    kern = functools.partial(_ffn_kernel, n_chunks=I // tI, tI=tI)
    out = pl.pallas_call(
        kern,
        out_shape=jax.ShapeDtypeStruct((Mp, H), jnp.bfloat16),
        grid_spec=pltpu.PrefetchScalarGridSpec(
            num_scalar_prefetch=0,
            grid=(Mp // tm,),
            in_specs=[
                pl.BlockSpec((tm, H), lambda i: (i, 0)),
                pl.BlockSpec((H, I), lambda i: (0, 0)),
                pl.BlockSpec((1, I), lambda i: (0, 0)),
                pl.BlockSpec((I, H), lambda i: (0, 0)),
                pl.BlockSpec((1, H), lambda i: (0, 0)),
                pl.BlockSpec((1, H), lambda i: (0, 0)),
                pl.BlockSpec((1, H), lambda i: (0, 0)),
            ],
            out_specs=pl.BlockSpec((tm, H), lambda i: (i, 0)),
            scratch_shapes=[pltpu.VMEM((tm, H), jnp.float32)],
        ),
        compiler_params=pltpu.CompilerParams(
            dimension_semantics=("parallel",), vmem_limit_bytes=VMEM_LIMIT),
    )(xp, wi, bi.reshape(1, I), wp, bp.reshape(1, H),
      gamma.reshape(1, H), beta.reshape(1, H))
    return out[:M] if Mp != M else out


# ---------------------------------------------------------------------------
# Embedding sum + LayerNorm (tiled over rows), bf16 output.
# ---------------------------------------------------------------------------
def _embed_ln_kernel(we_ref, pe_ref, te_ref, g_ref, b_ref, o_ref):
    x = we_ref[...] + pe_ref[...] + te_ref[...]
    mean = jnp.mean(x, axis=-1, keepdims=True)
    var = jnp.mean(jnp.square(x - mean), axis=-1, keepdims=True)
    xn = (x - mean) * lax.rsqrt(var + LN_EPS)
    o_ref[...] = (xn * g_ref[...] + b_ref[...]).astype(o_ref.dtype)


def embed_layernorm(word_e, pos_e, type_e, gamma, beta):
    M, H = word_e.shape
    tm, Mp = _row_tiling(M)
    word_e, pos_e, type_e = (_pad_rows(a, Mp) for a in (word_e, pos_e, type_e))
    out = pl.pallas_call(
        _embed_ln_kernel,
        out_shape=jax.ShapeDtypeStruct((Mp, H), jnp.bfloat16),
        grid_spec=pltpu.PrefetchScalarGridSpec(
            num_scalar_prefetch=0,
            grid=(Mp // tm,),
            in_specs=[
                pl.BlockSpec((tm, H), lambda i: (i, 0)),
                pl.BlockSpec((tm, H), lambda i: (i, 0)),
                pl.BlockSpec((tm, H), lambda i: (i, 0)),
                pl.BlockSpec((1, H), lambda i: (0, 0)),
                pl.BlockSpec((1, H), lambda i: (0, 0)),
            ],
            out_specs=pl.BlockSpec((tm, H), lambda i: (i, 0)),
        ),
        compiler_params=pltpu.CompilerParams(dimension_semantics=("parallel",)),
    )(word_e, pos_e, type_e, gamma.reshape(1, H), beta.reshape(1, H))
    return out[:M] if Mp != M else out


# ---------------------------------------------------------------------------
# Tiny-BERT parameters (deterministic random init, bert-base shapes scaled down)
# ---------------------------------------------------------------------------
CFG = dict(vocab=100, hidden=32, layers=2, heads=2, inter=64, max_pos=16, type_vocab=2)


def init_params(key, cfg):
    H, I = cfg["hidden"], cfg["inter"]
    keys = iter(jax.random.split(key, 8 + cfg["layers"] * 16))
    nrm = lambda shape: 0.02 * jax.random.normal(next(keys), shape, jnp.float32)
    p = {
        "word_emb": nrm((cfg["vocab"], H)),
        "pos_emb": nrm((cfg["max_pos"], H)),
        "type_emb": nrm((cfg["type_vocab"], H)),
        "emb_ln_g": jnp.ones((H,), jnp.float32),
        "emb_ln_b": jnp.zeros((H,), jnp.float32),
        "pool_w": nrm((H, H)),
        "pool_b": jnp.zeros((H,), jnp.float32),
        "layers": [],
    }
    for _ in range(cfg["layers"]):
        lp = {
            "wq": nrm((H, H)), "bq": jnp.zeros((H,), jnp.float32),
            "wk": nrm((H, H)), "bk": jnp.zeros((H,), jnp.float32),
            "wv": nrm((H, H)), "bv": jnp.zeros((H,), jnp.float32),
            "wo": nrm((H, H)), "bo": jnp.zeros((H,), jnp.float32),
            "ln1_g": jnp.ones((H,), jnp.float32), "ln1_b": jnp.zeros((H,), jnp.float32),
            "wi": nrm((H, I)), "bi": jnp.zeros((I,), jnp.float32),
            "wp": nrm((I, H)), "bp": jnp.zeros((H,), jnp.float32),
            "ln2_g": jnp.ones((H,), jnp.float32), "ln2_b": jnp.zeros((H,), jnp.float32),
        }
        p["layers"].append(lp)
    return p


def prepare_params(raw, cfg):
    """Inference-time params: fold 1/sqrt(dh) into w_q, cast matmul weights to bf16."""
    H, nH = cfg["hidden"], cfg["heads"]
    scale = 1.0 / math.sqrt(H // nH)
    bf = lambda a: a.astype(jnp.bfloat16)
    p = {
        "word_emb": raw["word_emb"], "pos_emb": raw["pos_emb"], "type_emb": raw["type_emb"],
        "emb_ln_g": raw["emb_ln_g"], "emb_ln_b": raw["emb_ln_b"],
        "pool_w": bf(raw["pool_w"]), "pool_b": raw["pool_b"],
        "layers": [],
    }
    for lp in raw["layers"]:
        p["layers"].append({
            "wq": bf(lp["wq"] * scale), "bq": lp["bq"] * scale,
            "wk": bf(lp["wk"]), "bk": lp["bk"],
            "wv": bf(lp["wv"]), "bv": lp["bv"],
            "wo": bf(lp["wo"]), "bo": lp["bo"],
            "ln1_g": lp["ln1_g"], "ln1_b": lp["ln1_b"],
            "wi": bf(lp["wi"]), "bi": lp["bi"],
            "wp": bf(lp["wp"]), "bp": lp["bp"],
            "ln2_g": lp["ln2_g"], "ln2_b": lp["ln2_b"],
        })
    return p


# ---------------------------------------------------------------------------
# BERT forward (glue in JAX, hot path in Pallas)
# ---------------------------------------------------------------------------
def bert_embedding_forward(params, input_ids, attention_mask, token_type_ids, cfg):
    B, S = input_ids.shape
    H, nH = cfg["hidden"], cfg["heads"]
    M = B * S

    # --- embeddings (gathers = glue, sum + LayerNorm = Pallas) ---
    word_e = jnp.take(params["word_emb"], input_ids.reshape(-1), axis=0)          # [M,H]
    pos_e = jnp.tile(params["pos_emb"][:S], (B, 1))                               # [M,H]
    type_e = jnp.take(params["type_emb"], token_type_ids.reshape(-1), axis=0)     # [M,H]
    h2d = embed_layernorm(word_e, pos_e, type_e,
                          params["emb_ln_g"], params["emb_ln_b"])                 # [M,H] bf16

    # Additive attention bias, hoisted once (no per-head repeat, no per-layer work).
    bias = ((1.0 - attention_mask.astype(jnp.float32)) * -10000.0).reshape(B, 1, S)

    for lp in params["layers"]:
        # Q/K/V projections: x read once, three lane-dense bf16 outputs.
        q, k, v = qkv_proj(h2d, lp["wq"], lp["wk"], lp["wv"],
                           lp["bq"], lp["bk"], lp["bv"])                           # [M,H] each
        # Flash attention fused with output projection + residual + LayerNorm;
        # q/k/v consumed via free reshapes (no XLA head transpose, lane-dense output).
        h3d = attn_out_ln(q.reshape(B, S, H), k.reshape(B, S, H), v.reshape(B, S, H),
                          bias, lp["wo"], lp["bo"], h2d.reshape(B, S, H),
                          lp["ln1_g"], lp["ln1_b"], nH)                            # [B,S,H] bf16
        h2d = h3d.reshape(M, H)
        # Whole FFN fused (chunked intermediate stays on-chip) + residual + LayerNorm.
        h2d = ffn_res_ln(h2d, lp["wi"], lp["bi"], lp["wp"], lp["bp"],
                         lp["ln2_g"], lp["ln2_b"])

    last_hidden_state = h2d.reshape(B, S, H).astype(jnp.float32)
    cls = h2d.reshape(B, S, H)[:, 0, :]                                            # [B,H]
    pooled_output = linear(cls, params["pool_w"], params["pool_b"], activation="tanh")
    return last_hidden_state, pooled_output


# ---------------------------------------------------------------------------
if __name__ == "__main__":
    key = jax.random.PRNGKey(0)
    k_param, k_ids, k_types = jax.random.split(key, 3)

    B, S = 2, 8
    params = prepare_params(init_params(k_param, CFG), CFG)

    input_ids = jax.random.randint(k_ids, (B, S), 0, CFG["vocab"], dtype=jnp.int32)
    attention_mask = jnp.ones((B, S), dtype=jnp.int32).at[1, 6:].set(0)   # pad tail of seq 1
    token_type_ids = jax.random.randint(k_types, (B, S), 0, CFG["type_vocab"], dtype=jnp.int32)

    fwd = jax.jit(functools.partial(bert_embedding_forward, cfg=CFG))
    last_hidden, pooled = fwd(params, input_ids, attention_mask, token_type_ids)
    jax.block_until_ready((last_hidden, pooled))

    assert last_hidden.shape == (B, S, CFG["hidden"])
    assert pooled.shape == (B, CFG["hidden"])
    assert bool(jnp.all(jnp.isfinite(last_hidden))) and bool(jnp.all(jnp.isfinite(pooled)))
    print("KERNEL_OK")
</pallas_src>

<mosaic_0001>
module attributes {stable_mosaic.version = 11 : i64} {
  func.func @_embed_ln_kernel(%arg0: i32, %arg1: memref<16x32xf32, #tpu.memory_space<vmem>>, %arg2: memref<16x32xf32, #tpu.memory_space<vmem>>, %arg3: memref<16x32xf32, #tpu.memory_space<vmem>>, %arg4: memref<1x32xf32, #tpu.memory_space<vmem>>, %arg5: memref<1x32xf32, #tpu.memory_space<vmem>>, %arg6: memref<16x32xbf16, #tpu.memory_space<vmem>>) attributes {dimension_semantics = [#tpu.dimension_semantics<parallel>], iteration_bounds = array<i64: 1>, scalar_prefetch = 0 : i64, scratch_operands = 0 : i64, tpu.core_type = #tpu.core_type<tc>, window_params = [{transform_indices = @transform_0, window_bounds = array<i64: 16, 32>}, {transform_indices = @transform_1, window_bounds = array<i64: 16, 32>}, {transform_indices = @transform_2, window_bounds = array<i64: 16, 32>}, {pipeline_mode = #tpu.pipeline_mode<synchronous>, transform_indices = @transform_3, window_bounds = array<i64: 1, 32>}, {pipeline_mode = #tpu.pipeline_mode<synchronous>, transform_indices = @transform_4, window_bounds = array<i64: 1, 32>}, {transform_indices = @transform_5, window_bounds = array<i64: 16, 32>}]} {
    %c0 = arith.constant 0 : index
    %c0_0 = arith.constant 0 : index
    %0 = vector.load %arg1[%c0, %c0_0] : memref<16x32xf32, #tpu.memory_space<vmem>>, vector<16x32xf32>
    %c0_1 = arith.constant 0 : index
    %c0_2 = arith.constant 0 : index
    %1 = vector.load %arg2[%c0_1, %c0_2] : memref<16x32xf32, #tpu.memory_space<vmem>>, vector<16x32xf32>
    %2 = arith.addf %0, %1 : vector<16x32xf32>
    %c0_3 = arith.constant 0 : index
    %c0_4 = arith.constant 0 : index
    %3 = vector.load %arg3[%c0_3, %c0_4] : memref<16x32xf32, #tpu.memory_space<vmem>>, vector<16x32xf32>
    %4 = arith.addf %2, %3 : vector<16x32xf32>
    %cst = arith.constant dense<0.000000e+00> : vector<16xf32>
    %5 = vector.multi_reduction <add>, %4, %cst [1] : vector<16x32xf32> to vector<16xf32>
    %6 = vector.shape_cast %5 : vector<16xf32> to vector<16x1xf32>
    %cst_5 = arith.constant 3.200000e+01 : f32
    %7 = vector.broadcast %cst_5 : f32 to vector<16x1xf32>
    %8 = arith.divf %6, %7 : vector<16x1xf32>
    %9 = vector.broadcast %8 : vector<16x1xf32> to vector<16x32xf32>
    %10 = arith.subf %4, %9 : vector<16x32xf32>
    %11 = arith.mulf %10, %10 : vector<16x32xf32>
    %cst_6 = arith.constant dense<0.000000e+00> : vector<16xf32>
    %12 = vector.multi_reduction <add>, %11, %cst_6 [1] : vector<16x32xf32> to vector<16xf32>
    %13 = vector.shape_cast %12 : vector<16xf32> to vector<16x1xf32>
    %cst_7 = arith.constant 3.200000e+01 : f32
    %14 = vector.broadcast %cst_7 : f32 to vector<16x1xf32>
    %15 = arith.divf %13, %14 : vector<16x1xf32>
    %16 = vector.broadcast %8 : vector<16x1xf32> to vector<16x32xf32>
    %17 = arith.subf %4, %16 : vector<16x32xf32>
    %cst_8 = arith.constant 9.99999996E-13 : f32
    %18 = vector.broadcast %cst_8 : f32 to vector<16x1xf32>
    %19 = arith.addf %15, %18 : vector<16x1xf32>
    %20 = math.rsqrt %19 : vector<16x1xf32>
    %21 = vector.broadcast %20 : vector<16x1xf32> to vector<16x32xf32>
    %22 = arith.mulf %17, %21 : vector<16x32xf32>
    %c0_9 = arith.constant 0 : index
    %c0_10 = arith.constant 0 : index
    %23 = vector.load %arg4[%c0_9, %c0_10] : memref<1x32xf32, #tpu.memory_space<vmem>>, vector<1x32xf32>
    %24 = vector.broadcast %23 : vector<1x32xf32> to vector<16x32xf32>
    %25 = arith.mulf %22, %24 : vector<16x32xf32>
    %c0_11 = arith.constant 0 : index
    %c0_12 = arith.constant 0 : index
    %26 = vector.load %arg5[%c0_11, %c0_12] : memref<1x32xf32, #tpu.memory_space<vmem>>, vector<1x32xf32>
    %27 = vector.broadcast %26 : vector<1x32xf32> to vector<16x32xf32>
    %28 = arith.addf %25, %27 : vector<16x32xf32>
    %29 = arith.truncf %28 : vector<16x32xf32> to vector<16x32xbf16>
    %c0_13 = arith.constant 0 : index
    %c0_14 = arith.constant 0 : index
    %30 = vector.load %arg6[%c0_13, %c0_14] : memref<16x32xbf16, #tpu.memory_space<vmem>>, vector<16x32xbf16>
    tpu.vector_store %arg6[%c0_13, %c0_14], %29 {strides = array<i32>} : memref<16x32xbf16, #tpu.memory_space<vmem>>, vector<16x32xbf16>,
    return
  }
  func.func @transform_0(%arg0: i32) -> (i32, i32) {
    %c0_i32 = arith.constant 0 : i32
    %c0_i32_0 = arith.constant 0 : i32
    return %arg0, %c0_i32 : i32, i32
  }
  func.func @transform_1(%arg0: i32) -> (i32, i32) {
    %c0_i32 = arith.constant 0 : i32
    %c0_i32_0 = arith.constant 0 : i32
    return %arg0, %c0_i32 : i32, i32
  }
  func.func @transform_2(%arg0: i32) -> (i32, i32) {
    %c0_i32 = arith.constant 0 : i32
    %c0_i32_0 = arith.constant 0 : i32
    return %arg0, %c0_i32 : i32, i32
  }
  func.func @transform_3(%arg0: i32) -> (i32, i32) {
    %c0_i32 = arith.constant 0 : i32
    %c0_i32_0 = arith.constant 0 : i32
    %c0_i32_1 = arith.constant 0 : i32
    return %c0_i32, %c0_i32_0 : i32, i32
  }
  func.func @transform_4(%arg0: i32) -> (i32, i32) {
    %c0_i32 = arith.constant 0 : i32
    %c0_i32_0 = arith.constant 0 : i32
    %c0_i32_1 = arith.constant 0 : i32
    return %c0_i32, %c0_i32_0 : i32, i32
  }
  func.func @transform_5(%arg0: i32) -> (i32, i32) {
    %c0_i32 = arith.constant 0 : i32
    %c0_i32_0 = arith.constant 0 : i32
    return %arg0, %c0_i32 : i32, i32
  }
}

module attributes {stable_mosaic.version = 11 : i64} {
  func.func @_qkv_kernel(%arg0: i32, %arg1: memref<16x32xbf16, #tpu.memory_space<vmem>>, %arg2: memref<32x32xbf16, #tpu.memory_space<vmem>>, %arg3: memref<32x32xbf16, #tpu.memory_space<vmem>>, %arg4: memref<32x32xbf16, #tpu.memory_space<vmem>>, %arg5: memref<1x32xf32, #tpu.memory_space<vmem>>, %arg6: memref<1x32xf32, #tpu.memory_space<vmem>>, %arg7: memref<1x32xf32, #tpu.memory_space<vmem>>, %arg8: memref<16x32xbf16, #tpu.memory_space<vmem>>, %arg9: memref<16x32xbf16, #tpu.memory_space<vmem>>, %arg10: memref<16x32xbf16, #tpu.memory_space<vmem>>) attributes {dimension_semantics = [#tpu.dimension_semantics<parallel>], iteration_bounds = array<i64: 1>, scalar_prefetch = 0 : i64, scratch_operands = 0 : i64, tpu.core_type = #tpu.core_type<tc>, window_params = [{transform_indices = @transform_0, window_bounds = array<i64: 16, 32>}, {pipeline_mode = #tpu.pipeline_mode<synchronous>, transform_indices = @transform_1, window_bounds = array<i64: 32, 32>}, {pipeline_mode = #tpu.pipeline_mode<synchronous>, transform_indices = @transform_2, window_bounds = array<i64: 32, 32>}, {pipeline_mode = #tpu.pipeline_mode<synchronous>, transform_indices = @transform_3, window_bounds = array<i64: 32, 32>}, {pipeline_mode = #tpu.pipeline_mode<synchronous>, transform_indices = @transform_4, window_bounds = array<i64: 1, 32>}, {pipeline_mode = #tpu.pipeline_mode<synchronous>, transform_indices = @transform_5, window_bounds = array<i64: 1, 32>}, {pipeline_mode = #tpu.pipeline_mode<synchronous>, transform_indices = @transform_6, window_bounds = array<i64: 1, 32>}, {transform_indices = @transform_7, window_bounds = array<i64: 16, 32>}, {transform_indices = @transform_8, window_bounds = array<i64: 16, 32>}, {transform_indices = @transform_9, window_bounds = array<i64: 16, 32>}]} {
    %c0 = arith.constant 0 : index
    %c0_0 = arith.constant 0 : index
    %0 = vector.load %arg1[%c0, %c0_0] : memref<16x32xbf16, #tpu.memory_space<vmem>>, vector<16x32xbf16>
    %c0_1 = arith.constant 0 : index
    %c0_2 = arith.constant 0 : index
    %1 = vector.load %arg2[%c0_1, %c0_2] : memref<32x32xbf16, #tpu.memory_space<vmem>>, vector<32x32xbf16>
    %cst = arith.constant dense<0.000000e+00> : vector<16x32xf32>
    %2 = tpu.matmul %0, %1, %cst {dimension_numbers = #tpu.dot_dimension_numbers<[1], [0], [0], [1], [0, 0, 1, 1], [], []>} : vector<16x32xbf16>, vector<32x32xbf16>, vector<16x32xf32> -> vector<16x32xf32>
    %c0_3 = arith.constant 0 : index
    %c0_4 = arith.constant 0 : index
    %3 = vector.load %arg5[%c0_3, %c0_4] : memref<1x32xf32, #tpu.memory_space<vmem>>, vector<1x32xf32>
    %4 = vector.broadcast %3 : vector<1x32xf32> to vector<16x32xf32>
    %5 = arith.addf %2, %4 : vector<16x32xf32>
    %6 = arith.truncf %5 : vector<16x32xf32> to vector<16x32xbf16>
    %c0_5 = arith.constant 0 : index
    %c0_6 = arith.constant 0 : index
    %7 = vector.load %arg8[%c0_5, %c0_6] : memref<16x32xbf16, #tpu.memory_space<vmem>>, vector<16x32xbf16>
    tpu.vector_store %arg8[%c0_5, %c0_6], %6 {strides = array<i32>} : memref<16x32xbf16, #tpu.memory_space<vmem>>, vector<16x32xbf16>,
    %c0_7 = arith.constant 0 : index
    %c0_8 = arith.constant 0 : index
    %8 = vector.load %arg3[%c0_7, %c0_8] : memref<32x32xbf16, #tpu.memory_space<vmem>>, vector<32x32xbf16>
    %cst_9 = arith.constant dense<0.000000e+00> : vector<16x32xf32>
    %9 = tpu.matmul %0, %8, %cst_9 {dimension_numbers = #tpu.dot_dimension_numbers<[1], [0], [0], [1], [0, 0, 1, 1], [], []>} : vector<16x32xbf16>, vector<32x32xbf16>, vector<16x32xf32> -> vector<16x32xf32>
    %c0_10 = arith.constant 0 : index
    %c0_11 = arith.constant 0 : index
    %10 = vector.load %arg6[%c0_10, %c0_11] : memref<1x32xf32, #tpu.memory_space<vmem>>, vector<1x32xf32>
    %11 = vector.broadcast %10 : vector<1x32xf32> to vector<16x32xf32>
    %12 = arith.addf %9, %11 : vector<16x32xf32>
    %13 = arith.truncf %12 : vector<16x32xf32> to vector<16x32xbf16>
    %c0_12 = arith.constant 0 : index
    %c0_13 = arith.constant 0 : index
    %14 = vector.load %arg9[%c0_12, %c0_13] : memref<16x32xbf16, #tpu.memory_space<vmem>>, vector<16x32xbf16>
    tpu.vector_store %arg9[%c0_12, %c0_13], %13 {strides = array<i32>} : memref<16x32xbf16, #tpu.memory_space<vmem>>, vector<16x32xbf16>,
    %c0_14 = arith.constant 0 : index
    %c0_15 = arith.constant 0 : index
    %15 = vector.load %arg4[%c0_14, %c0_15] : memref<32x32xbf16, #tpu.memory_space<vmem>>, vector<32x32xbf16>
    %cst_16 = arith.constant dense<0.000000e+00> : vector<16x32xf32>
    %16 = tpu.matmul %0, %15, %cst_16 {dimension_numbers = #tpu.dot_dimension_numbers<[1], [0], [0], [1], [0, 0, 1, 1], [], []>} : vector<16x32xbf16>, vector<32x32xbf16>, vector<16x32xf32> -> vector<16x32xf32>
    %c0_17 = arith.constant 0 : index
    %c0_18 = arith.constant 0 : index
    %17 = vector.load %arg7[%c0_17, %c0_18] : memref<1x32xf32, #tpu.memory_space<vmem>>, vector<1x32xf32>
    %18 = vector.broadcast %17 : vector<1x32xf32> to vector<16x32xf32>
    %19 = arith.addf %16, %18 : vector<16x32xf32>
    %20 = arith.truncf %19 : vector<16x32xf32> to vector<16x32xbf16>
    %c0_19 = arith.constant 0 : index
    %c0_20 = arith.constant 0 : index
    %21 = vector.load %arg10[%c0_19, %c0_20] : memref<16x32xbf16, #tpu.memory_space<vmem>>, vector<16x32xbf16>
    tpu.vector_store %arg10[%c0_19, %c0_20], %20 {strides = array<i32>} : memref<16x32xbf16, #tpu.memory_space<vmem>>, vector<16x32xbf16>,
    return
  }
  func.func @transform_0(%arg0: i32) -> (i32, i32) {
    %c0_i32 = arith.constant 0 : i32
    %c0_i32_0 = arith.constant 0 : i32
    return %arg0, %c0_i32 : i32, i32
  }
  func.func @transform_1(%arg0: i32) -> (i32, i32) {
    %c0_i32 = arith.constant 0 : i32
    %c0_i32_0 = arith.constant 0 : i32
    %c0_i32_1 = arith.constant 0 : i32
    return %c0_i32, %c0_i32_0 : i32, i32
  }
  func.func @transform_2(%arg0: i32) -> (i32, i32) {
    %c0_i32 = arith.constant 0 : i32
    %c0_i32_0 = arith.constant 0 : i32
    %c0_i32_1 = arith.constant 0 : i32
    return %c0_i32, %c0_i32_0 : i32, i32
  }
  func.func @transform_3(%arg0: i32) -> (i32, i32) {
    %c0_i32 = arith.constant 0 : i32
    %c0_i32_0 = arith.constant 0 : i32
    %c0_i32_1 = arith.constant 0 : i32
    return %c0_i32, %c0_i32_0 : i32, i32
  }
  func.func @transform_4(%arg0: i32) -> (i32, i32) {
    %c0_i32 = arith.constant 0 : i32
    %c0_i32_0 = arith.constant 0 : i32
    %c0_i32_1 = arith.constant 0 : i32
    return %c0_i32, %c0_i32_0 : i32, i32
  }
  func.func @transform_5(%arg0: i32) -> (i32, i32) {
    %c0_i32 = arith.constant 0 : i32
    %c0_i32_0 = arith.constant 0 : i32
    %c0_i32_1 = arith.constant 0 : i32
    return %c0_i32, %c0_i32_0 : i32, i32
  }
  func.func @transform_6(%arg0: i32) -> (i32, i32) {
    %c0_i32 = arith.constant 0 : i32
    %c0_i32_0 = arith.constant 0 : i32
    %c0_i32_1 = arith.constant 0 : i32
    return %c0_i32, %c0_i32_0 : i32, i32
  }
  func.func @transform_7(%arg0: i32) -> (i32, i32) {
    %c0_i32 = arith.constant 0 : i32
    %c0_i32_0 = arith.constant 0 : i32
    return %arg0, %c0_i32 : i32, i32
  }
  func.func @transform_8(%arg0: i32) -> (i32, i32) {
    %c0_i32 = arith.constant 0 : i32
    %c0_i32_0 = arith.constant 0 : i32
    return %arg0, %c0_i32 : i32, i32
  }
  func.func @transform_9(%arg0: i32) -> (i32, i32) {
    %c0_i32 = arith.constant 0 : i32
    %c0_i32_0 = arith.constant 0 : i32
    return %arg0, %c0_i32 : i32, i32
  }
}

module attributes {stable_mosaic.version = 11 : i64} {
  func.func @_attn_out_ln_kernel(%arg0: i32, %arg1: i32, %arg2: i32, %arg3: memref<1x1x8xf32, #tpu.memory_space<vmem>>, %arg4: memref<1x8x32xbf16, #tpu.memory_space<vmem>>, %arg5: memref<1x8x32xbf16, #tpu.memory_space<vmem>>, %arg6: memref<1x8x32xbf16, #tpu.memory_space<vmem>>, %arg7: memref<1x8x32xbf16, #tpu.memory_space<vmem>>, %arg8: memref<32x32xbf16, #tpu.memory_space<vmem>>, %arg9: memref<1x32xf32, #tpu.memory_space<vmem>>, %arg10: memref<1x32xf32, #tpu.memory_space<vmem>>, %arg11: memref<1x32xf32, #tpu.memory_space<vmem>>, %arg12: memref<1x8x32xbf16, #tpu.memory_space<vmem>>, %arg13: memref<2x8x1xf32, #tpu.memory_space<vmem>>, %arg14: memref<2x8x1xf32, #tpu.memory_space<vmem>>, %arg15: memref<2x8x16xf32, #tpu.memory_space<vmem>>) attributes {dimension_semantics = [#tpu.dimension_semantics<parallel>, #tpu.dimension_semantics<parallel>, #tpu.dimension_semantics<arbitrary>], iteration_bounds = array<i64: 2, 1, 1>, scalar_prefetch = 0 : i64, scratch_operands = 3 : i64, tpu.core_type = #tpu.core_type<tc>, window_params = [{transform_indices = @transform_0, window_bounds = array<i64: 1, 1, 8>}, {transform_indices = @transform_1, window_bounds = array<i64: 1, 8, 32>}, {transform_indices = @transform_2, window_bounds = array<i64: 1, 8, 32>}, {transform_indices = @transform_3, window_bounds = array<i64: 1, 8, 32>}, {transform_indices = @transform_4, window_bounds = array<i64: 1, 8, 32>}, {pipeline_mode = #tpu.pipeline_mode<synchronous>, transform_indices = @transform_5, window_bounds = array<i64: 32, 32>}, {pipeline_mode = #tpu.pipeline_mode<synchronous>, transform_indices = @transform_6, window_bounds = array<i64: 1, 32>}, {pipeline_mode = #tpu.pipeline_mode<synchronous>, transform_indices = @transform_7, window_bounds = array<i64: 1, 32>}, {pipeline_mode = #tpu.pipeline_mode<synchronous>, transform_indices = @transform_8, window_bounds = array<i64: 1, 32>}, {transform_indices = @transform_9, window_bounds = array<i64: 1, 8, 32>}]} {
    %c0_i32 = arith.constant 0 : i32
    %0 = arith.cmpi eq, %arg2, %c0_i32 : i32
    %1 = arith.extui %0 : i1 to i32
    %c0_i32_0 = arith.constant 0 : i32
    %2 = arith.cmpi ne, %1, %c0_i32_0 : i32
    scf.if %2 {
      %cst_56 = arith.constant 0xFF800000 : f32
      %90 = vector.broadcast %cst_56 : f32 to vector<2x8x1xf32>
      %c0_57 = arith.constant 0 : index
      %c0_58 = arith.constant 0 : index
      %c0_59 = arith.constant 0 : index
      %91 = vector.load %arg13[%c0_57, %c0_58, %c0_59] : memref<2x8x1xf32, #tpu.memory_space<vmem>>, vector<2x8x1xf32>
      tpu.vector_store %arg13[%c0_57, %c0_58, %c0_59], %90 {strides = array<i32>} : memref<2x8x1xf32, #tpu.memory_space<vmem>>, vector<2x8x1xf32>,
      %cst_60 = arith.constant 0.000000e+00 : f32
      %92 = vector.broadcast %cst_60 : f32 to vector<2x8x1xf32>
      %c0_61 = arith.constant 0 : index
      %c0_62 = arith.constant 0 : index
      %c0_63 = arith.constant 0 : index
      %93 = vector.load %arg14[%c0_61, %c0_62, %c0_63] : memref<2x8x1xf32, #tpu.memory_space<vmem>>, vector<2x8x1xf32>
      tpu.vector_store %arg14[%c0_61, %c0_62, %c0_63], %92 {strides = array<i32>} : memref<2x8x1xf32, #tpu.memory_space<vmem>>, vector<2x8x1xf32>,
      %cst_64 = arith.constant 0.000000e+00 : f32
      %94 = vector.broadcast %cst_64 : f32 to vector<2x8x16xf32>
      %c0_65 = arith.constant 0 : index
      %c0_66 = arith.constant 0 : index
      %c0_67 = arith.constant 0 : index
      %95 = vector.load %arg15[%c0_65, %c0_66, %c0_67] : memref<2x8x16xf32, #tpu.memory_space<vmem>>, vector<2x8x16xf32>
      tpu.vector_store %arg15[%c0_65, %c0_66, %c0_67], %94 {strides = array<i32>} : memref<2x8x16xf32, #tpu.memory_space<vmem>>, vector<2x8x16xf32>,
    } else {
    }
    %c0 = arith.constant 0 : index
    %c0_1 = arith.constant 0 : index
    %c0_2 = arith.constant 0 : index
    %3 = vector.load %arg4[%c0, %c0_1, %c0_2] : memref<1x8x32xbf16, #tpu.memory_space<vmem>>, vector<1x8x32xbf16>
    %4 = vector.shape_cast %3 : vector<1x8x32xbf16> to vector<8x32xbf16>
    %c0_3 = arith.constant 0 : index
    %c0_4 = arith.constant 0 : index
    %c0_5 = arith.constant 0 : index
    %5 = vector.load %arg5[%c0_3, %c0_4, %c0_5] : memref<1x8x32xbf16, #tpu.memory_space<vmem>>, vector<1x8x32xbf16>
    %6 = vector.shape_cast %5 : vector<1x8x32xbf16> to vector<8x32xbf16>
    %c0_6 = arith.constant 0 : index
    %c0_7 = arith.constant 0 : index
    %c0_8 = arith.constant 0 : index
    %7 = vector.load %arg6[%c0_6, %c0_7, %c0_8] : memref<1x8x32xbf16, #tpu.memory_space<vmem>>, vector<1x8x32xbf16>
    %8 = vector.shape_cast %7 : vector<1x8x32xbf16> to vector<8x32xbf16>
    %c0_9 = arith.constant 0 : index
    %c0_10 = arith.constant 0 : index
    %c0_11 = arith.constant 0 : index
    %9 = vector.load %arg3[%c0_9, %c0_10, %c0_11] : memref<1x1x8xf32, #tpu.memory_space<vmem>>, vector<1x1x8xf32>
    %10 = vector.shape_cast %9 : vector<1x1x8xf32> to vector<1x8xf32>
    %11 = vector.extract_strided_slice %4 {offsets = [0, 0], sizes = [8, 16], strides = [1, 1]} : vector<8x32xbf16> to vector<8x16xbf16>
    %12 = vector.extract_strided_slice %6 {offsets = [0, 0], sizes = [8, 16], strides = [1, 1]} : vector<8x32xbf16> to vector<8x16xbf16>
    %cst = arith.constant dense<0.000000e+00> : vector<8x8xf32>
    %13 = tpu.matmul %11, %12, %cst {dimension_numbers = #tpu.dot_dimension_numbers<[1], [1], [0], [0], [0, 0, 1, 0], [], []>} : vector<8x16xbf16>, vector<8x16xbf16>, vector<8x8xf32> -> vector<8x8xf32>
    %14 = vector.broadcast %10 : vector<1x8xf32> to vector<8x8xf32>
    %15 = arith.addf %13, %14 : vector<8x8xf32>
    %c0_12 = arith.constant 0 : index
    %c0_13 = arith.constant 0 : index
    %c0_14 = arith.constant 0 : index
    %16 = vector.load %arg13[%c0_12, %c0_13, %c0_14] : memref<2x8x1xf32, #tpu.memory_space<vmem>>, vector<1x8x1xf32>
    %17 = vector.shape_cast %16 : vector<1x8x1xf32> to vector<8x1xf32>
    %cst_15 = arith.constant dense<0xFF800000> : vector<8xf32>
    %18 = vector.multi_reduction <maximumf>, %15, %cst_15 [1] : vector<8x8xf32> to vector<8xf32>
    %19 = vector.shape_cast %18 : vector<8xf32> to vector<8x1xf32>
    %20 = arith.maximumf %17, %19 : vector<8x1xf32>
    %21 = arith.subf %17, %20 : vector<8x1xf32>
    %22 = math.exp %21 : vector<8x1xf32>
    %23 = vector.broadcast %20 : vector<8x1xf32> to vector<8x8xf32>
    %24 = arith.subf %15, %23 : vector<8x8xf32>
    %25 = math.exp %24 : vector<8x8xf32>
    %c0_16 = arith.constant 0 : index
    %c0_17 = arith.constant 0 : index
    %c0_18 = arith.constant 0 : index
    %26 = vector.load %arg14[%c0_16, %c0_17, %c0_18] : memref<2x8x1xf32, #tpu.memory_space<vmem>>, vector<1x8x1xf32>
    %27 = vector.shape_cast %26 : vector<1x8x1xf32> to vector<8x1xf32>
    %28 = arith.mulf %22, %27 : vector<8x1xf32>
    %cst_19 = arith.constant dense<0.000000e+00> : vector<8xf32>
    %29 = vector.multi_reduction <add>, %25, %cst_19 [1] : vector<8x8xf32> to vector<8xf32>
    %30 = vector.shape_cast %29 : vector<8xf32> to vector<8x1xf32>
    %31 = arith.addf %28, %30 : vector<8x1xf32>
    %c0_20 = arith.constant 0 : index
    %c0_21 = arith.constant 0 : index
    %c0_22 = arith.constant 0 : index
    %32 = vector.load %arg14[%c0_20, %c0_21, %c0_22] : memref<2x8x1xf32, #tpu.memory_space<vmem>>, vector<1x8x1xf32>
    %33 = vector.shape_cast %32 : vector<1x8x1xf32> to vector<8x1xf32>
    %34 = vector.shape_cast %31 : vector<8x1xf32> to vector<1x8x1xf32>
    tpu.vector_store %arg14[%c0_20, %c0_21, %c0_22], %34 {strides = array<i32>} : memref<2x8x1xf32, #tpu.memory_space<vmem>>, vector<1x8x1xf32>,
    %c0_23 = arith.constant 0 : index
    %c0_24 = arith.constant 0 : index
    %c0_25 = arith.constant 0 : index
    %35 = vector.load %arg15[%c0_23, %c0_24, %c0_25] : memref<2x8x16xf32, #tpu.memory_space<vmem>>, vector<1x8x16xf32>
    %36 = vector.shape_cast %35 : vector<1x8x16xf32> to vector<8x16xf32>
    %37 = vector.broadcast %22 : vector<8x1xf32> to vector<8x16xf32>
    %38 = arith.mulf %37, %36 : vector<8x16xf32>
    %39 = arith.truncf %25 : vector<8x8xf32> to vector<8x8xbf16>
    %40 = vector.extract_strided_slice %8 {offsets = [0, 0], sizes = [8, 16], strides = [1, 1]} : vector<8x32xbf16> to vector<8x16xbf16>
    %cst_26 = arith.constant dense<0.000000e+00> : vector<8x16xf32>
    %41 = tpu.matmul %39, %40, %cst_26 {dimension_numbers = #tpu.dot_dimension_numbers<[1], [0], [0], [1], [0, 0, 1, 1], [], []>} : vector<8x8xbf16>, vector<8x16xbf16>, vector<8x16xf32> -> vector<8x16xf32>
    %42 = arith.addf %38, %41 : vector<8x16xf32>
    %c0_27 = arith.constant 0 : index
    %c0_28 = arith.constant 0 : index
    %c0_29 = arith.constant 0 : index
    %43 = vector.load %arg15[%c0_27, %c0_28, %c0_29] : memref<2x8x16xf32, #tpu.memory_space<vmem>>, vector<1x8x16xf32>
    %44 = vector.shape_cast %43 : vector<1x8x16xf32> to vector<8x16xf32>
    %45 = vector.shape_cast %42 : vector<8x16xf32> to vector<1x8x16xf32>
    tpu.vector_store %arg15[%c0_27, %c0_28, %c0_29], %45 {strides = array<i32>} : memref<2x8x16xf32, #tpu.memory_space<vmem>>, vector<1x8x16xf32>,
    %c0_30 = arith.constant 0 : index
    %c0_31 = arith.constant 0 : index
    %c0_32 = arith.constant 0 : index
    %46 = vector.load %arg13[%c0_30, %c0_31, %c0_32] : memref<2x8x1xf32, #tpu.memory_space<vmem>>, vector<1x8x1xf32>
    %47 = vector.shape_cast %46 : vector<1x8x1xf32> to vector<8x1xf32>
    %48 = vector.shape_cast %20 : vector<8x1xf32> to vector<1x8x1xf32>
    tpu.vector_store %arg13[%c0_30, %c0_31, %c0_32], %48 {strides = array<i32>} : memref<2x8x1xf32, #tpu.memory_space<vmem>>, vector<1x8x1xf32>,
    %49 = vector.extract_strided_slice %4 {offsets = [0, 16], sizes = [8, 16], strides = [1, 1]} : vector<8x32xbf16> to vector<8x16xbf16>
    %50 = vector.extract_strided_slice %6 {offsets = [0, 16], sizes = [8, 16], strides = [1, 1]} : vector<8x32xbf16> to vector<8x16xbf16>
    %cst_33 = arith.constant dense<0.000000e+00> : vector<8x8xf32>
    %51 = tpu.matmul %49, %50, %cst_33 {dimension_numbers = #tpu.dot_dimension_numbers<[1], [1], [0], [0], [0, 0, 1, 0], [], []>} : vector<8x16xbf16>, vector<8x16xbf16>, vector<8x8xf32> -> vector<8x8xf32>
    %52 = vector.broadcast %10 : vector<1x8xf32> to vector<8x8xf32>
    %53 = arith.addf %51, %52 : vector<8x8xf32>
    %c1 = arith.constant 1 : index
    %c0_34 = arith.constant 0 : index
    %c0_35 = arith.constant 0 : index
    %54 = vector.load %arg13[%c1, %c0_34, %c0_35] : memref<2x8x1xf32, #tpu.memory_space<vmem>>, vector<1x8x1xf32>
    %55 = vector.shape_cast %54 : vector<1x8x1xf32> to vector<8x1xf32>
    %cst_36 = arith.constant dense<0xFF800000> : vector<8xf32>
    %56 = vector.multi_reduction <maximumf>, %53, %cst_36 [1] : vector<8x8xf32> to vector<8xf32>
    %57 = vector.shape_cast %56 : vector<8xf32> to vector<8x1xf32>
    %58 = arith.maximumf %55, %57 : vector<8x1xf32>
    %59 = arith.subf %55, %58 : vector<8x1xf32>
    %60 = math.exp %59 : vector<8x1xf32>
    %61 = vector.broadcast %58 : vector<8x1xf32> to vector<8x8xf32>
    %62 = arith.subf %53, %61 : vector<8x8xf32>
    %63 = math.exp %62 : vector<8x8xf32>
    %c1_37 = arith.constant 1 : index
    %c0_38 = arith.constant 0 : index
    %c0_39 = arith.constant 0 : index
    %64 = vector.load %arg14[%c1_37, %c0_38, %c0_39] : memref<2x8x1xf32, #tpu.memory_space<vmem>>, vector<1x8x1xf32>
    %65 = vector.shape_cast %64 : vector<1x8x1xf32> to vector<8x1xf32>
    %66 = arith.mulf %60, %65 : vector<8x1xf32>
    %cst_40 = arith.constant dense<0.000000e+00> : vector<8xf32>
    %67 = vector.multi_reduction <add>, %63, %cst_40 [1] : vector<8x8xf32> to vector<8xf32>
    %68 = vector.shape_cast %67 : vector<8xf32> to vector<8x1xf32>
    %69 = arith.addf %66, %68 : vector<8x1xf32>
    %c1_41 = arith.constant 1 : index
    %c0_42 = arith.constant 0 : index
    %c0_43 = arith.constant 0 : index
    %70 = vector.load %arg14[%c1_41, %c0_42, %c0_43] : memref<2x8x1xf32, #tpu.memory_space<vmem>>, vector<1x8x1xf32>
    %71 = vector.shape_cast %70 : vector<1x8x1xf32> to vector<8x1xf32>
    %72 = vector.shape_cast %69 : vector<8x1xf32> to vector<1x8x1xf32>
    tpu.vector_store %arg14[%c1_41, %c0_42, %c0_43], %72 {strides = array<i32>} : memref<2x8x1xf32, #tpu.memory_space<vmem>>, vector<1x8x1xf32>,
    %c1_44 = arith.constant 1 : index
    %c0_45 = arith.constant 0 : index
    %c0_46 = arith.constant 0 : index
    %73 = vector.load %arg15[%c1_44, %c0_45, %c0_46] : memref<2x8x16xf32, #tpu.memory_space<vmem>>, vector<1x8x16xf32>
    %74 = vector.shape_cast %73 : vector<1x8x16xf32> to vector<8x16xf32>
    %75 = vector.broadcast %60 : vector<8x1xf32> to vector<8x16xf32>
    %76 = arith.mulf %75, %74 : vector<8x16xf32>
    %77 = arith.truncf %63 : vector<8x8xf32> to vector<8x8xbf16>
    %78 = vector.extract_strided_slice %8 {offsets = [0, 16], sizes = [8, 16], strides = [1, 1]} : vector<8x32xbf16> to vector<8x16xbf16>
    %cst_47 = arith.constant dense<0.000000e+00> : vector<8x16xf32>
    %79 = tpu.matmul %77, %78, %cst_47 {dimension_numbers = #tpu.dot_dimension_numbers<[1], [0], [0], [1], [0, 0, 1, 1], [], []>} : vector<8x8xbf16>, vector<8x16xbf16>, vector<8x16xf32> -> vector<8x16xf32>
    %80 = arith.addf %76, %79 : vector<8x16xf32>
    %c1_48 = arith.constant 1 : index
    %c0_49 = arith.constant 0 : index
    %c0_50 = arith.constant 0 : index
    %81 = vector.load %arg15[%c1_48, %c0_49, %c0_50] : memref<2x8x16xf32, #tpu.memory_space<vmem>>, vector<1x8x16xf32>
    %82 = vector.shape_cast %81 : vector<1x8x16xf32> to vector<8x16xf32>
    %83 = vector.shape_cast %80 : vector<8x16xf32> to vector<1x8x16xf32>
    tpu.vector_store %arg15[%c1_48, %c0_49, %c0_50], %83 {strides = array<i32>} : memref<2x8x16xf32, #tpu.memory_space<vmem>>, vector<1x8x16xf32>,
    %c1_51 = arith.constant 1 : index
    %c0_52 = arith.constant 0 : index
    %c0_53 = arith.constant 0 : index
    %84 = vector.load %arg13[%c1_51, %c0_52, %c0_53] : memref<2x8x1xf32, #tpu.memory_space<vmem>>, vector<1x8x1xf32>
    %85 = vector.shape_cast %84 : vector<1x8x1xf32> to vector<8x1xf32>
    %86 = vector.shape_cast %58 : vector<8x1xf32> to vector<1x8x1xf32>
    tpu.vector_store %arg13[%c1_51, %c0_52, %c0_53], %86 {strides = array<i32>} : memref<2x8x1xf32, #tpu.memory_space<vmem>>, vector<1x8x1xf32>,
    %c0_i32_54 = arith.constant 0 : i32
    %87 = arith.cmpi eq, %arg2, %c0_i32_54 : i32
    %88 = arith.extui %87 : i1 to i32
    %c0_i32_55 = arith.constant 0 : i32
    %89 = arith.cmpi ne, %88, %c0_i32_55 : i32
    scf.if %89 {
      %c0_56 = arith.constant 0 : index
      %c0_57 = arith.constant 0 : index
      %c0_58 = arith.constant 0 : index
      %90 = vector.load %arg15[%c0_56, %c0_57, %c0_58] : memref<2x8x16xf32, #tpu.memory_space<vmem>>, vector<1x8x16xf32>
      %91 = vector.shape_cast %90 : vector<1x8x16xf32> to vector<8x16xf32>
      %c0_59 = arith.constant 0 : index
      %c0_60 = arith.constant 0 : index
      %c0_61 = arith.constant 0 : index
      %92 = vector.load %arg14[%c0_59, %c0_60, %c0_61] : memref<2x8x1xf32, #tpu.memory_space<vmem>>, vector<1x8x1xf32>
      %93 = vector.shape_cast %92 : vector<1x8x1xf32> to vector<8x1xf32>
      %94 = tpu.reciprocal %93 {approx = true} : vector<8x1xf32> -> vector<8x1xf32>
      %95 = vector.broadcast %94 : vector<8x1xf32> to vector<8x16xf32>
      %96 = arith.mulf %91, %95 : vector<8x16xf32>
      %97 = arith.truncf %96 : vector<8x16xf32> to vector<8x16xbf16>
      %c0_62 = arith.constant 0 : index
      %c0_63 = arith.constant 0 : index
      %98 = vector.load %arg8[%c0_62, %c0_63] : memref<32x32xbf16, #tpu.memory_space<vmem>>, vector<16x32xbf16>
      %cst_64 = arith.constant dense<0.000000e+00> : vector<8x32xf32>
      %99 = tpu.matmul %97, %98, %cst_64 {dimension_numbers = #tpu.dot_dimension_numbers<[1], [0], [0], [1], [0, 0, 1, 1], [], []>} : vector<8x16xbf16>, vector<16x32xbf16>, vector<8x32xf32> -> vector<8x32xf32>
      %c1_65 = arith.constant 1 : index
      %c0_66 = arith.constant 0 : index
      %c0_67 = arith.constant 0 : index
      %100 = vector.load %arg15[%c1_65, %c0_66, %c0_67] : memref<2x8x16xf32, #tpu.memory_space<vmem>>, vector<1x8x16xf32>
      %101 = vector.shape_cast %100 : vector<1x8x16xf32> to vector<8x16xf32>
      %c1_68 = arith.constant 1 : index
      %c0_69 = arith.constant 0 : index
      %c0_70 = arith.constant 0 : index
      %102 = vector.load %arg14[%c1_68, %c0_69, %c0_70] : memref<2x8x1xf32, #tpu.memory_space<vmem>>, vector<1x8x1xf32>
      %103 = vector.shape_cast %102 : vector<1x8x1xf32> to vector<8x1xf32>
      %104 = tpu.reciprocal %103 {approx = true} : vector<8x1xf32> -> vector<8x1xf32>
      %105 = vector.broadcast %104 : vector<8x1xf32> to vector<8x16xf32>
      %106 = arith.mulf %101, %105 : vector<8x16xf32>
      %107 = arith.truncf %106 : vector<8x16xf32> to vector<8x16xbf16>
      %c16 = arith.constant 16 : index
      %c0_71 = arith.constant 0 : index
      %108 = vector.load %arg8[%c16, %c0_71] : memref<32x32xbf16, #tpu.memory_space<vmem>>, vector<16x32xbf16>
      %cst_72 = arith.constant dense<0.000000e+00> : vector<8x32xf32>
      %109 = tpu.matmul %107, %108, %cst_72 {dimension_numbers = #tpu.dot_dimension_numbers<[1], [0], [0], [1], [0, 0, 1, 1], [], []>} : vector<8x16xbf16>, vector<16x32xbf16>, vector<8x32xf32> -> vector<8x32xf32>
      %110 = arith.addf %99, %109 : vector<8x32xf32>
      %c0_73 = arith.constant 0 : index
      %c0_74 = arith.constant 0 : index
      %111 = vector.load %arg9[%c0_73, %c0_74] : memref<1x32xf32, #tpu.memory_space<vmem>>, vector<1x32xf32>
      %112 = vector.broadcast %111 : vector<1x32xf32> to vector<8x32xf32>
      %113 = arith.addf %110, %112 : vector<8x32xf32>
      %c0_75 = arith.constant 0 : index
      %c0_76 = arith.constant 0 : index
      %c0_77 = arith.constant 0 : index
      %114 = vector.load %arg7[%c0_75, %c0_76, %c0_77] : memref<1x8x32xbf16, #tpu.memory_space<vmem>>, vector<1x8x32xbf16>
      %115 = vector.shape_cast %114 : vector<1x8x32xbf16> to vector<8x32xbf16>
      %116 = arith.extf %115 : vector<8x32xbf16> to vector<8x32xf32>
      %117 = arith.addf %113, %116 : vector<8x32xf32>
      %cst_78 = arith.constant dense<0.000000e+00> : vector<8xf32>
      %118 = vector.multi_reduction <add>, %117, %cst_78 [1] : vector<8x32xf32> to vector<8xf32>
      %119 = vector.shape_cast %118 : vector<8xf32> to vector<8x1xf32>
      %cst_79 = arith.constant 3.200000e+01 : f32
      %120 = vector.broadcast %cst_79 : f32 to vector<8x1xf32>
      %121 = arith.divf %119, %120 : vector<8x1xf32>
      %122 = vector.broadcast %121 : vector<8x1xf32> to vector<8x32xf32>
      %123 = arith.subf %117, %122 : vector<8x32xf32>
      %124 = arith.mulf %123, %123 : vector<8x32xf32>
      %cst_80 = arith.constant dense<0.000000e+00> : vector<8xf32>
      %125 = vector.multi_reduction <add>, %124, %cst_80 [1] : vector<8x32xf32> to vector<8xf32>
      %126 = vector.shape_cast %125 : vector<8xf32> to vector<8x1xf32>
      %cst_81 = arith.constant 3.200000e+01 : f32
      %127 = vector.broadcast %cst_81 : f32 to vector<8x1xf32>
      %128 = arith.divf %126, %127 : vector<8x1xf32>
      %129 = vector.broadcast %121 : vector<8x1xf32> to vector<8x32xf32>
      %130 = arith.subf %117, %129 : vector<8x32xf32>
      %cst_82 = arith.constant 9.99999996E-13 : f32
      %131 = vector.broadcast %cst_82 : f32 to vector<8x1xf32>
      %132 = arith.addf %128, %131 : vector<8x1xf32>
      %133 = math.rsqrt %132 : vector<8x1xf32>
      %134 = vector.broadcast %133 : vector<8x1xf32> to vector<8x32xf32>
      %135 = arith.mulf %130, %134 : vector<8x32xf32>
      %c0_83 = arith.constant 0 : index
      %c0_84 = arith.constant 0 : index
      %136 = vector.load %arg10[%c0_83, %c0_84] : memref<1x32xf32, #tpu.memory_space<vmem>>, vector<1x32xf32>
      %137 = vector.broadcast %136 : vector<1x32xf32> to vector<8x32xf32>
      %138 = arith.mulf %135, %137 : vector<8x32xf32>
      %c0_85 = arith.constant 0 : index
      %c0_86 = arith.constant 0 : index
      %139 = vector.load %arg11[%c0_85, %c0_86] : memref<1x32xf32, #tpu.memory_space<vmem>>, vector<1x32xf32>
      %140 = vector.broadcast %139 : vector<1x32xf32> to vector<8x32xf32>
      %141 = arith.addf %138, %140 : vector<8x32xf32>
      %142 = arith.truncf %141 : vector<8x32xf32> to vector<8x32xbf16>
      %c0_87 = arith.constant 0 : index
      %c0_88 = arith.constant 0 : index
      %c0_89 = arith.constant 0 : index
      %143 = vector.load %arg12[%c0_87, %c0_88, %c0_89] : memref<1x8x32xbf16, #tpu.memory_space<vmem>>, vector<1x8x32xbf16>
      %144 = vector.shape_cast %143 : vector<1x8x32xbf16> to vector<8x32xbf16>
      %145 = vector.shape_cast %142 : vector<8x32xbf16> to vector<1x8x32xbf16>
      tpu.vector_store %arg12[%c0_87, %c0_88, %c0_89], %145 {strides = array<i32>} : memref<1x8x32xbf16, #tpu.memory_space<vmem>>, vector<1x8x32xbf16>,
    } else {
    }
    return
  }
  func.func @transform_0(%arg0: i32, %arg1: i32, %arg2: i32) -> (i32, i32, i32) {
    %c0_i32 = arith.constant 0 : i32
    %c0_i32_0 = arith.constant 0 : i32
    return %arg0, %c0_i32, %arg2 : i32, i32, i32
  }
  func.func @transform_1(%arg0: i32, %arg1: i32, %arg2: i32) -> (i32, i32, i32) {
    %c0_i32 = arith.constant 0 : i32
    %c0_i32_0 = arith.constant 0 : i32
    return %arg0, %arg1, %c0_i32 : i32, i32, i32
  }
  func.func @transform_2(%arg0: i32, %arg1: i32, %arg2: i32) -> (i32, i32, i32) {
    %c0_i32 = arith.constant 0 : i32
    %c0_i32_0 = arith.constant 0 : i32
    return %arg0, %arg2, %c0_i32 : i32, i32, i32
  }
  func.func @transform_3(%arg0: i32, %arg1: i32, %arg2: i32) -> (i32, i32, i32) {
    %c0_i32 = arith.constant 0 : i32
    %c0_i32_0 = arith.constant 0 : i32
    return %arg0, %arg2, %c0_i32 : i32, i32, i32
  }
  func.func @transform_4(%arg0: i32, %arg1: i32, %arg2: i32) -> (i32, i32, i32) {
    %c0_i32 = arith.constant 0 : i32
    %c0_i32_0 = arith.constant 0 : i32
    return %arg0, %arg1, %c0_i32 : i32, i32, i32
  }
  func.func @transform_5(%arg0: i32, %arg1: i32, %arg2: i32) -> (i32, i32) {
    %c0_i32 = arith.constant 0 : i32
    %c0_i32_0 = arith.constant 0 : i32
    %c0_i32_1 = arith.constant 0 : i32
    return %c0_i32, %c0_i32_0 : i32, i32
  }
  func.func @transform_6(%arg0: i32, %arg1: i32, %arg2: i32) -> (i32, i32) {
    %c0_i32 = arith.constant 0 : i32
    %c0_i32_0 = arith.constant 0 : i32
    %c0_i32_1 = arith.constant 0 : i32
    return %c0_i32, %c0_i32_0 : i32, i32
  }
  func.func @transform_7(%arg0: i32, %arg1: i32, %arg2: i32) -> (i32, i32) {
    %c0_i32 = arith.constant 0 : i32
    %c0_i32_0 = arith.constant 0 : i32
    %c0_i32_1 = arith.constant 0 : i32
    return %c0_i32, %c0_i32_0 : i32, i32
  }
  func.func @transform_8(%arg0: i32, %arg1: i32, %arg2: i32) -> (i32, i32) {
    %c0_i32 = arith.constant 0 : i32
    %c0_i32_0 = arith.constant 0 : i32
    %c0_i32_1 = arith.constant 0 : i32
    return %c0_i32, %c0_i32_0 : i32, i32
  }
  func.func @transform_9(%arg0: i32, %arg1: i32, %arg2: i32) -> (i32, i32, i32) {
    %c0_i32 = arith.constant 0 : i32
    %c0_i32_0 = arith.constant 0 : i32
    return %arg0, %arg1, %c0_i32 : i32, i32, i32
  }
}

module attributes {stable_mosaic.version = 11 : i64} {
  func.func @_ffn_kernel(%arg0: i32, %arg1: memref<16x32xbf16, #tpu.memory_space<vmem>>, %arg2: memref<32x64xbf16, #tpu.memory_space<vmem>>, %arg3: memref<1x64xf32, #tpu.memory_space<vmem>>, %arg4: memref<64x32xbf16, #tpu.memory_space<vmem>>, %arg5: memref<1x32xf32, #tpu.memory_space<vmem>>, %arg6: memref<1x32xf32, #tpu.memory_space<vmem>>, %arg7: memref<1x32xf32, #tpu.memory_space<vmem>>, %arg8: memref<16x32xbf16, #tpu.memory_space<vmem>>, %arg9: memref<16x32xf32, #tpu.memory_space<vmem>>) attributes {dimension_semantics = [#tpu.dimension_semantics<parallel>], iteration_bounds = array<i64: 1>, scalar_prefetch = 0 : i64, scratch_operands = 1 : i64, tpu.core_type = #tpu.core_type<tc>, window_params = [{transform_indices = @transform_0, window_bounds = array<i64: 16, 32>}, {pipeline_mode = #tpu.pipeline_mode<synchronous>, transform_indices = @transform_1, window_bounds = array<i64: 32, 64>}, {pipeline_mode = #tpu.pipeline_mode<synchronous>, transform_indices = @transform_2, window_bounds = array<i64: 1, 64>}, {pipeline_mode = #tpu.pipeline_mode<synchronous>, transform_indices = @transform_3, window_bounds = array<i64: 64, 32>}, {pipeline_mode = #tpu.pipeline_mode<synchronous>, transform_indices = @transform_4, window_bounds = array<i64: 1, 32>}, {pipeline_mode = #tpu.pipeline_mode<synchronous>, transform_indices = @transform_5, window_bounds = array<i64: 1, 32>}, {pipeline_mode = #tpu.pipeline_mode<synchronous>, transform_indices = @transform_6, window_bounds = array<i64: 1, 32>}, {transform_indices = @transform_7, window_bounds = array<i64: 16, 32>}]} {
    %c0 = arith.constant 0 : index
    %c0_0 = arith.constant 0 : index
    %0 = vector.load %arg1[%c0, %c0_0] : memref<16x32xbf16, #tpu.memory_space<vmem>>, vector<16x32xbf16>
    %cst = arith.constant 0.000000e+00 : f32
    %1 = vector.broadcast %cst : f32 to vector<16x32xf32>
    %c0_1 = arith.constant 0 : index
    %c0_2 = arith.constant 0 : index
    %2 = vector.load %arg9[%c0_1, %c0_2] : memref<16x32xf32, #tpu.memory_space<vmem>>, vector<16x32xf32>
    tpu.vector_store %arg9[%c0_1, %c0_2], %1 {strides = array<i32>} : memref<16x32xf32, #tpu.memory_space<vmem>>, vector<16x32xf32>,
    %c0_3 = arith.constant 0 : index
    %c0_4 = arith.constant 0 : index
    %3 = vector.load %arg2[%c0_3, %c0_4] : memref<32x64xbf16, #tpu.memory_space<vmem>>, vector<32x64xbf16>
    %cst_5 = arith.constant dense<0.000000e+00> : vector<16x64xf32>
    %4 = tpu.matmul %0, %3, %cst_5 {dimension_numbers = #tpu.dot_dimension_numbers<[1], [0], [0], [1], [0, 0, 1, 1], [], []>} : vector<16x32xbf16>, vector<32x64xbf16>, vector<16x64xf32> -> vector<16x64xf32>
    %c0_6 = arith.constant 0 : index
    %c0_7 = arith.constant 0 : index
    %5 = vector.load %arg3[%c0_6, %c0_7] : memref<1x64xf32, #tpu.memory_space<vmem>>, vector<1x64xf32>
    %6 = vector.broadcast %5 : vector<1x64xf32> to vector<16x64xf32>
    %7 = arith.addf %4, %6 : vector<16x64xf32>
    %cst_8 = arith.constant 5.000000e-01 : f32
    %8 = vector.broadcast %cst_8 : f32 to vector<16x64xf32>
    %9 = arith.mulf %8, %7 : vector<16x64xf32>
    %cst_9 = arith.constant 0.707106769 : f32
    %10 = vector.broadcast %cst_9 : f32 to vector<16x64xf32>
    %11 = arith.mulf %7, %10 : vector<16x64xf32>
    %12 = math.erf %11 : vector<16x64xf32>
    %cst_10 = arith.constant 1.000000e+00 : f32
    %13 = vector.broadcast %cst_10 : f32 to vector<16x64xf32>
    %14 = arith.addf %13, %12 : vector<16x64xf32>
    %15 = arith.mulf %9, %14 : vector<16x64xf32>
    %c0_11 = arith.constant 0 : index
    %c0_12 = arith.constant 0 : index
    %16 = vector.load %arg9[%c0_11, %c0_12] : memref<16x32xf32, #tpu.memory_space<vmem>>, vector<16x32xf32>
    %17 = arith.truncf %15 : vector<16x64xf32> to vector<16x64xbf16>
    %c0_13 = arith.constant 0 : index
    %c0_14 = arith.constant 0 : index
    %18 = vector.load %arg4[%c0_13, %c0_14] : memref<64x32xbf16, #tpu.memory_space<vmem>>, vector<64x32xbf16>
    %cst_15 = arith.constant dense<0.000000e+00> : vector<16x32xf32>
    %19 = tpu.matmul %17, %18, %cst_15 {dimension_numbers = #tpu.dot_dimension_numbers<[1], [0], [0], [1], [0, 0, 1, 1], [], []>} : vector<16x64xbf16>, vector<64x32xbf16>, vector<16x32xf32> -> vector<16x32xf32>
    %20 = arith.addf %16, %19 : vector<16x32xf32>
    %c0_16 = arith.constant 0 : index
    %c0_17 = arith.constant 0 : index
    %21 = vector.load %arg9[%c0_16, %c0_17] : memref<16x32xf32, #tpu.memory_space<vmem>>, vector<16x32xf32>
    tpu.vector_store %arg9[%c0_16, %c0_17], %20 {strides = array<i32>} : memref<16x32xf32, #tpu.memory_space<vmem>>, vector<16x32xf32>,
    %c0_18 = arith.constant 0 : index
    %c0_19 = arith.constant 0 : index
    %22 = vector.load %arg9[%c0_18, %c0_19] : memref<16x32xf32, #tpu.memory_space<vmem>>, vector<16x32xf32>
    %c0_20 = arith.constant 0 : index
    %c0_21 = arith.constant 0 : index
    %23 = vector.load %arg5[%c0_20, %c0_21] : memref<1x32xf32, #tpu.memory_space<vmem>>, vector<1x32xf32>
    %24 = vector.broadcast %23 : vector<1x32xf32> to vector<16x32xf32>
    %25 = arith.addf %22, %24 : vector<16x32xf32>
    %26 = arith.extf %0 : vector<16x32xbf16> to vector<16x32xf32>
    %27 = arith.addf %25, %26 : vector<16x32xf32>
    %cst_22 = arith.constant dense<0.000000e+00> : vector<16xf32>
    %28 = vector.multi_reduction <add>, %27, %cst_22 [1] : vector<16x32xf32> to vector<16xf32>
    %29 = vector.shape_cast %28 : vector<16xf32> to vector<16x1xf32>
    %cst_23 = arith.constant 3.200000e+01 : f32
    %30 = vector.broadcast %cst_23 : f32 to vector<16x1xf32>
    %31 = arith.divf %29, %30 : vector<16x1xf32>
    %32 = vector.broadcast %31 : vector<16x1xf32> to vector<16x32xf32>
    %33 = arith.subf %27, %32 : vector<16x32xf32>
    %34 = arith.mulf %33, %33 : vector<16x32xf32>
    %cst_24 = arith.constant dense<0.000000e+00> : vector<16xf32>
    %35 = vector.multi_reduction <add>, %34, %cst_24 [1] : vector<16x32xf32> to vector<16xf32>
    %36 = vector.shape_cast %35 : vector<16xf32> to vector<16x1xf32>
    %cst_25 = arith.constant 3.200000e+01 : f32
    %37 = vector.broadcast %cst_25 : f32 to vector<16x1xf32>
    %38 = arith.divf %36, %37 : vector<16x1xf32>
    %39 = vector.broadcast %31 : vector<16x1xf32> to vector<16x32xf32>
    %40 = arith.subf %27, %39 : vector<16x32xf32>
    %cst_26 = arith.constant 9.99999996E-13 : f32
    %41 = vector.broadcast %cst_26 : f32 to vector<16x1xf32>
    %42 = arith.addf %38, %41 : vector<16x1xf32>
    %43 = math.rsqrt %42 : vector<16x1xf32>
    %44 = vector.broadcast %43 : vector<16x1xf32> to vector<16x32xf32>
    %45 = arith.mulf %40, %44 : vector<16x32xf32>
    %c0_27 = arith.constant 0 : index
    %c0_28 = arith.constant 0 : index
    %46 = vector.load %arg6[%c0_27, %c0_28] : memref<1x32xf32, #tpu.memory_space<vmem>>, vector<1x32xf32>
    %47 = vector.broadcast %46 : vector<1x32xf32> to vector<16x32xf32>
    %48 = arith.mulf %45, %47 : vector<16x32xf32>
    %c0_29 = arith.constant 0 : index
    %c0_30 = arith.constant 0 : index
    %49 = vector.load %arg7[%c0_29, %c0_30] : memref<1x32xf32, #tpu.memory_space<vmem>>, vector<1x32xf32>
    %50 = vector.broadcast %49 : vector<1x32xf32> to vector<16x32xf32>
    %51 = arith.addf %48, %50 : vector<16x32xf32>
    %52 = arith.truncf %51 : vector<16x32xf32> to vector<16x32xbf16>
    %c0_31 = arith.constant 0 : index
    %c0_32 = arith.constant 0 : index
    %53 = vector.load %arg8[%c0_31, %c0_32] : memref<16x32xbf16, #tpu.memory_space<vmem>>, vector<16x32xbf16>
    tpu.vector_store %arg8[%c0_31, %c0_32], %52 {strides = array<i32>} : memref<16x32xbf16, #tpu.memory_space<vmem>>, vector<16x32xbf16>,
    return
  }
  func.func @transform_0(%arg0: i32) -> (i32, i32) {
    %c0_i32 = arith.constant 0 : i32
    %c0_i32_0 = arith.constant 0 : i32
    return %arg0, %c0_i32 : i32, i32
  }
  func.func @transform_1(%arg0: i32) -> (i32, i32) {
    %c0_i32 = arith.constant 0 : i32
    %c0_i32_0 = arith.constant 0 : i32
    %c0_i32_1 = arith.constant 0 : i32
    return %c0_i32, %c0_i32_0 : i32, i32
  }
  func.func @transform_2(%arg0: i32) -> (i32, i32) {
    %c0_i32 = arith.constant 0 : i32
    %c0_i32_0 = arith.constant 0 : i32
    %c0_i32_1 = arith.constant 0 : i32
    return %c0_i32, %c0_i32_0 : i32, i32
  }
  func.func @transform_3(%arg0: i32) -> (i32, i32) {
    %c0_i32 = arith.constant 0 : i32
    %c0_i32_0 = arith.constant 0 : i32
    %c0_i32_1 = arith.constant 0 : i32
    return %c0_i32, %c0_i32_0 : i32, i32
  }
  func.func @transform_4(%arg0: i32) -> (i32, i32) {
    %c0_i32 = arith.constant 0 : i32
    %c0_i32_0 = arith.constant 0 : i32
    %c0_i32_1 = arith.constant 0 : i32
    return %c0_i32, %c0_i32_0 : i32, i32
  }
  func.func @transform_5(%arg0: i32) -> (i32, i32) {
    %c0_i32 = arith.constant 0 : i32
    %c0_i32_0 = arith.constant 0 : i32
    %c0_i32_1 = arith.constant 0 : i32
    return %c0_i32, %c0_i32_0 : i32, i32
  }
  func.func @transform_6(%arg0: i32) -> (i32, i32) {
    %c0_i32 = arith.constant 0 : i32
    %c0_i32_0 = arith.constant 0 : i32
    %c0_i32_1 = arith.constant 0 : i32
    return %c0_i32, %c0_i32_0 : i32, i32
  }
  func.func @transform_7(%arg0: i32) -> (i32, i32) {
    %c0_i32 = arith.constant 0 : i32
    %c0_i32_0 = arith.constant 0 : i32
    return %arg0, %c0_i32 : i32, i32
  }
}

module attributes {stable_mosaic.version = 11 : i64} {
  func.func @_linear_kernel(%arg0: i32, %arg1: memref<8x32xbf16, #tpu.memory_space<vmem>>, %arg2: memref<32x32xbf16, #tpu.memory_space<vmem>>, %arg3: memref<1x32xf32, #tpu.memory_space<vmem>>, %arg4: memref<8x32xf32, #tpu.memory_space<vmem>>) attributes {dimension_semantics = [#tpu.dimension_semantics<parallel>], iteration_bounds = array<i64: 1>, scalar_prefetch = 0 : i64, scratch_operands = 0 : i64, tpu.core_type = #tpu.core_type<tc>, window_params = [{transform_indices = @transform_0, window_bounds = array<i64: 8, 32>}, {pipeline_mode = #tpu.pipeline_mode<synchronous>, transform_indices = @transform_1, window_bounds = array<i64: 32, 32>}, {pipeline_mode = #tpu.pipeline_mode<synchronous>, transform_indices = @transform_2, window_bounds = array<i64: 1, 32>}, {transform_indices = @transform_3, window_bounds = array<i64: 8, 32>}]} {
    %c0 = arith.constant 0 : index
    %c0_0 = arith.constant 0 : index
    %0 = vector.load %arg1[%c0, %c0_0] : memref<8x32xbf16, #tpu.memory_space<vmem>>, vector<8x32xbf16>
    %c0_1 = arith.constant 0 : index
    %c0_2 = arith.constant 0 : index
    %1 = vector.load %arg2[%c0_1, %c0_2] : memref<32x32xbf16, #tpu.memory_space<vmem>>, vector<32x32xbf16>
    %cst = arith.constant dense<0.000000e+00> : vector<8x32xf32>
    %2 = tpu.matmul %0, %1, %cst {dimension_numbers = #tpu.dot_dimension_numbers<[1], [0], [0], [1], [0, 0, 1, 1], [], []>} : vector<8x32xbf16>, vector<32x32xbf16>, vector<8x32xf32> -> vector<8x32xf32>
    %c0_3 = arith.constant 0 : index
    %c0_4 = arith.constant 0 : index
    %3 = vector.load %arg3[%c0_3, %c0_4] : memref<1x32xf32, #tpu.memory_space<vmem>>, vector<1x32xf32>
    %4 = vector.broadcast %3 : vector<1x32xf32> to vector<8x32xf32>
    %5 = arith.addf %2, %4 : vector<8x32xf32>
    %6 = math.tanh %5 : vector<8x32xf32>
    %c0_5 = arith.constant 0 : index
    %c0_6 = arith.constant 0 : index
    %7 = vector.load %arg4[%c0_5, %c0_6] : memref<8x32xf32, #tpu.memory_space<vmem>>, vector<8x32xf32>
    tpu.vector_store %arg4[%c0_5, %c0_6], %6 {strides = array<i32>} : memref<8x32xf32, #tpu.memory_space<vmem>>, vector<8x32xf32>,
    return
  }
  func.func @transform_0(%arg0: i32) -> (i32, i32) {
    %c0_i32 = arith.constant 0 : i32
    %c0_i32_0 = arith.constant 0 : i32
    return %arg0, %c0_i32 : i32, i32
  }
  func.func @transform_1(%arg0: i32) -> (i32, i32) {
    %c0_i32 = arith.constant 0 : i32
    %c0_i32_0 = arith.constant 0 : i32
    %c0_i32_1 = arith.constant 0 : i32
    return %c0_i32, %c0_i32_0 : i32, i32
  }
  func.func @transform_2(%arg0: i32) -> (i32, i32) {
    %c0_i32 = arith.constant 0 : i32
    %c0_i32_0 = arith.constant 0 : i32
    %c0_i32_1 = arith.constant 0 : i32
    return %c0_i32, %c0_i32_0 : i32, i32
  }
  func.func @transform_3(%arg0: i32) -> (i32, i32) {
    %c0_i32 = arith.constant 0 : i32
    %c0_i32_0 = arith.constant 0 : i32
    return %arg0, %c0_i32 : i32, i32
  }
}

</mosaic_0001>

<bundles_post_ra>
// kernel: bert_embedding_forward.8
= control target key start
LH: loop header
LB: loop body
LE: loop exit
PB: predicated region body
PF: predicated region fallthrough
CT: control target
= control target key end

     0   :  { %vm30_vm0 = vcmask 261120   ;;  %v112_v12 = vmov 32.0   ;;  %vm96_vm6 = vcmask 257024   ;;  %s177_s0 = inlined_call_operand.vmem [shape: f32[16,32], index: 0, kind: input, shape index: {}]   ;;  %s178_s1 = inlined_call_operand.vmem [shape: f32[16,32], index: 1, kind: input, shape index: {}]   ;;  %s179_s2 = inlined_call_operand.vmem [shape: f32[16,32], index: 2, kind: input, shape index: {}]   ;;  %s180_s3 = inlined_call_operand.vmem [shape: f32[1,32], index: 3, kind: input, shape index: {}]   ;;  %s181_s4 = inlined_call_operand.vmem [shape: f32[1,32], index: 4, kind: input, shape index: {}]   ;;  %s182_s5 = inlined_call_operand.vmem [shape: bf16[16,32], index: 5, kind: output, shape index: {}]  }
   0x1   :  { %v20_v0 = vld [vmem:[%s177_s0] sm:$0xff]  ;;  %v21_v4 = vld [vmem:[%s177_s0 + $0x8] sm:$0xff]  ;;  %106 = vrcp.f32 %v112_v12 }
   0x2   :  { %v22_v1 = vld [vmem:[%s178_s1] sm:$0xff]  ;;  %v23_v5 = vld [vmem:[%s178_s1 + $0x8] sm:$0xff] }
   0x3   :  { %v26_v2 = vld [vmem:[%s179_s2] sm:$0xff]  ;;  %v24_v3 = vadd.f32 %v22_v1, %v20_v0  ;;  %v25_v7 = vadd.f32 %v23_v5, %v21_v4  ;;  %v27_v8 = vld [vmem:[%s179_s2 + $0x8] sm:$0xff] }
   0x4   :  { %v104_v43 = vld [vmem:[%s180_s3] ss:$0 sm:$0xff] }
   0x5   :  { %v28_v6 = vadd.f32 %v26_v2, %v24_v3  ;;  %v29_v10 = vadd.f32 %v27_v8, %v25_v7  ;;  %v105_v46 = vld [vmem:[%s181_s4] ss:$0 sm:$0xff] }
   0x7   :  { %v31_v9 = vsel %vm30_vm0, %v28_v6, 0.0  ;;  %v34_v11 = vsel %vm30_vm0, %v29_v10, 0.0  ;;  %v107_v13 = vpop.eup %106 }
   0x8   :  { %32 = vadd.xlane.f32.xlu0 %v31_v9  ;;  %v38_v14 = vmul.f32 32.0, %v107_v13  ;;  %vm42_vm1 = vweird.f32 %v107_v13 }
   0xa   :  { %v39_v15 = vsub.f32 1.0, %v38_v14 }
   0xc   :  { %v40_v16 = vmul.f32 %v107_v13, %v39_v15 }
   0xe   :  { %v41_v17 = vadd.f32 %v107_v13, %v40_v16 }
  0x10   :  { %35 = vadd.xlane.f32.xlu0 %v34_v11  ;;  %v43_v18 = vsel %vm42_vm1, %v107_v13, %v41_v17 }
  0x7b   :  { %v33_v19 = vpop.xlane.xlu0 %32 }
  0x7c   :  { %v44_v20 = vmul.f32 %v43_v18, %v33_v19 }
  0x7e   :  { %v46_v21 = vsub.f32 %v28_v6, %v44_v20 }
  0x80   :  { %v48_v22 = vmul.f32 %v46_v21, %v46_v21 }
  0x82   :  { %v50_v23 = vsel %vm30_vm0, %v48_v22, 0.0 }
  0x83   :  { %51 = vadd.xlane.f32.xlu1 %v50_v23  ;;  %v36_v24 = vpop.xlane.xlu0 %35 }
  0x84   :  { %v45_v25 = vmul.f32 %v43_v18, %v36_v24 }
  0x86   :  { %v47_v26 = vsub.f32 %v29_v10, %v45_v25 }
  0x88   :  { %v49_v27 = vmul.f32 %v47_v26, %v47_v26 }
  0x8a   :  { %v53_v28 = vsel %vm30_vm0, %v49_v27, 0.0 }
  0x8b   :  { %54 = vadd.xlane.f32.xlu1 %v53_v28 }
  0xf6   :  { %v52_v29 = vpop.xlane.xlu1 %51 }
  0xf7   :  { %v56_v30 = vmul.f32 %v52_v29, %v43_v18 }
  0xf9   :  { %v58_v31 = vadd.f32 1e-12, %v56_v30 }
  0xfb   :  { %108 = vrsqrt.f32 %v58_v31  ;;  %vm66_vm3 = vweird.f32 %v58_v31 }
  0xfe   :  { %v55_v32 = vpop.xlane.xlu1 %54 }
  0xff   :  { %v57_v33 = vmul.f32 %v55_v32, %v43_v18 }
 0x101   :  { %v109_v34 = vpop.eup %108  ;;  %v59_v35 = vadd.f32 1e-12, %v57_v33 }
 0x102   :  { %v61_v36 = vmul.f32 %v109_v34, %v58_v31  ;;  %vm67_vm2 = vweird.f32 %v109_v34 }
 0x103   :  { %110 = vrsqrt.f32 %v59_v35  ;;  %vm68_vm4 = vmor %vm66_vm3, %vm67_vm2  ;;  %vm76_vm7 = vweird.f32 %v59_v35 }
 0x104   :  { %v62_v37 = vmul.f32 %v109_v34, %v61_v36 }
 0x106   :  { %v63_v38 = vmul.f32 0.5, %v62_v37 }
 0x108   :  { %v64_v39 = vsub.f32 1.5, %v63_v38 }
 0x109   :  { %v111_v40 = vpop.eup %110 }
 0x10a   :  { %v65_v41 = vmul.f32 %v109_v34, %v64_v39  ;;  %v71_v42 = vmul.f32 %v111_v40, %v59_v35  ;;  %vm77_vm5 = vweird.f32 %v111_v40 }
 0x10b   :  { %vm78_vm8 = vmor %vm76_vm7, %vm77_vm5 }
 0x10c   :  { %v69_v44 = vsel %vm68_vm4, %v109_v34, %v65_v41  ;;  %v72_v45 = vmul.f32 %v111_v40, %v71_v42 }
 0x10d   :  { %v80_v47 = vmul.f32 %v69_v44, %v46_v21 }
 0x10e   :  { %v73_v48 = vmul.f32 0.5, %v72_v45 }
 0x10f   :  { %v86_v49 = vmul.f32 %v104_v43, %v80_v47 }
 0x110   :  { %v74_v50 = vsub.f32 1.5, %v73_v48 }
 0x111   :  { %v92_v51 = vadd.f32 %v105_v46, %v86_v49 }
 0x112   :  { %v75_v52 = vmul.f32 %v111_v40, %v74_v50 }
 0x113   :  { %v94_v53 = vpack.c.bf16 %v92_v51, %v92_v51 }
 0x114   :  { %v79_v54 = vsel %vm78_vm8, %v111_v40, %v75_v52 }
 0x115   :  { %97 = vst.msk [vmem:[%s182_s5] sm:$0xf] %vm96_vm6, %v94_v53  ;;  %v81_v55 = vmul.f32 %v79_v54, %v47_v26 }
 0x117   :  { %v87_v56 = vmul.f32 %v104_v43, %v81_v55 }
 0x119   :  { %v93_v57 = vadd.f32 %v105_v46, %v87_v56 }
 0x11b   :  { %v95_v58 = vpack.c.bf16 %v93_v57, %v93_v57 }
 0x11d   :  { %98 = vst.msk [vmem:[%s182_s5 + $0x4] sm:$0xf] %vm96_vm6, %v95_v58 }

// kernel: bert_embedding_forward.9
= control target key start
LH: loop header
LB: loop body
LE: loop exit
PB: predicated region body
PF: predicated region fallthrough
CT: control target
= control target key end

     0   :  { %vm57_vm0 = vcmask 261120   ;;  %vm77_vm1 = vcmask 257024   ;;  %s313_s1 = inlined_call_operand.vmem [shape: bf16[32,32], index: 1, kind: input, shape index: {}]   ;;  %s314_s2 = inlined_call_operand.vmem [shape: bf16[32,32], index: 2, kind: input, shape index: {}]   ;;  %s315_s3 = inlined_call_operand.vmem [shape: bf16[32,32], index: 3, kind: input, shape index: {}]   ;;  %s316_s4 = inlined_call_operand.vmem [shape: f32[1,32], index: 4, kind: input, shape index: {}]   ;;  %s317_s0 = inlined_call_operand.vmem [shape: bf16[16,32], index: 0, kind: input, shape index: {}]   ;;  %s318_s5 = inlined_call_operand.vmem [shape: f32[1,32], index: 5, kind: input, shape index: {}]   ;;  %s319_s6 = inlined_call_operand.vmem [shape: f32[1,32], index: 6, kind: input, shape index: {}]   ;;  %s320_s7 = inlined_call_operand.vmem [shape: bf16[16,32], index: 7, kind: output, shape index: {0}]   ;;  %s321_s8 = inlined_call_operand.vmem [shape: bf16[16,32], index: 8, kind: output, shape index: {1}]   ;;  %s322_s9 = inlined_call_operand.vmem [shape: bf16[16,32], index: 9, kind: output, shape index: {2}]  }
   0x1   :  { %v201_v0 = vld [vmem:[%s313_s1 + $0x8] sm:$0xff]  ;;  %v200_v3 = vld [vmem:[%s313_s1] sm:$0xff] }
   0x2   :  { %v203_v1 = vld [vmem:[%s314_s2 + $0x8] sm:$0xff]  ;;  %67 = vmatpush.bf16.msra.mxu0 %v201_v0  ;;  %v202_v4 = vld [vmem:[%s314_s2] sm:$0xff] }
   0x3   :  { %v205_v2 = vld [vmem:[%s315_s3 + $0x8] sm:$0xff]  ;;  %106 = vmatpush.bf16.msra.mxu1 %v203_v1  ;;  %v204_v5 = vld [vmem:[%s315_s3] sm:$0xff] }
   0x4   :  { %144 = vmatpush.bf16.msra.mxu2 %v205_v2  ;;  %v199_v6 = vld [vmem:[%s317_s0] sm:$0xff] }
   0x5   :  { %v206_v7 = vld [vmem:[%s316_s4] ss:$0 sm:$0xff] }
   0x6   :  { %68 = vmatpush.bf16.msra.mxu0 %v200_v3  ;;  %v207_v8 = vld [vmem:[%s318_s5] ss:$0 sm:$0xff] }
   0x7   :  { %107 = vmatpush.bf16.msra.mxu1 %v202_v4  ;;  %v208_v15 = vld [vmem:[%s319_s6] ss:$0 sm:$0xff] }
   0x8   :  { %145 = vmatpush.bf16.msra.mxu2 %v204_v5 }
   0x9   :  { %180 = vmatmul.msk.bf16.vlgmr.msra.gmra.mxu0 %vm57_vm0, %v199_v6 }
   0xa   :  { %189 = vmatmul.msk.bf16.vlgmr.msra.gmra.mxu1 %vm57_vm0, %v199_v6 }
   0xb   :  { %198 = vmatmul.msk.bf16.vlgmr.msra.gmra.mxu2 %vm57_vm0, %v199_v6 }
  0x86   :  { %v70_v9 = vpop.f32.mrf.mxu0 }
  0x87   :  { %v109_v10 = vpop.f32.mrf.mxu1  ;;  %v71_v11 = vadd.f32 %v206_v7, %v70_v9 }
  0x88   :  { %v110_v12 = vadd.f32 %v207_v8, %v109_v10 }
  0x89   :  { %v75_v13 = vpack.c.bf16 %v71_v11, %v71_v11 }
  0x8a   :  { %v114_v14 = vpack.c.bf16 %v110_v12, %v110_v12 }
  0x8b   :  { %78 = vst.msk [vmem:[%s320_s7] sm:$0xf] %vm77_vm1, %v75_v13 }
  0x8c   :  { %116 = vst.msk [vmem:[%s321_s8] sm:$0xf] %vm77_vm1, %v114_v14 }
  0x8e   :  { %v147_v16 = vpop.f32.mrf.mxu2  ;;  %v72_v18 = vpop.f32.mrf.mxu0 }
  0x8f   :  { %v148_v17 = vadd.f32 %v208_v15, %v147_v16  ;;  %v111_v19 = vpop.f32.mrf.mxu1  ;;  %v73_v20 = vadd.f32 %v206_v7, %v72_v18 }
  0x90   :  { %v112_v21 = vadd.f32 %v207_v8, %v111_v19 }
  0x91   :  { %v152_v22 = vpack.c.bf16 %v148_v17, %v148_v17  ;;  %v76_v23 = vpack.c.bf16 %v73_v20, %v73_v20 }
  0x92   :  { %v115_v24 = vpack.c.bf16 %v112_v21, %v112_v21 }
  0x93   :  { %154 = vst.msk [vmem:[%s322_s9] sm:$0xf] %vm77_vm1, %v152_v22 }
  0x94   :  { %79 = vst.msk [vmem:[%s320_s7 + $0x4] sm:$0xf] %vm77_vm1, %v76_v23 }
  0x95   :  { %117 = vst.msk [vmem:[%s321_s8 + $0x4] sm:$0xf] %vm77_vm1, %v115_v24 }
  0x96   :  { %v149_v25 = vpop.f32.mrf.mxu2 }
  0x97   :  { %v150_v26 = vadd.f32 %v208_v15, %v149_v25 }
  0x99   :  { %v153_v27 = vpack.c.bf16 %v150_v26, %v150_v26 }
  0x9b   :  { %155 = vst.msk [vmem:[%s322_s9 + $0x4] sm:$0xf] %vm77_vm1, %v153_v27 }

// kernel: bert_embedding_forward.11
= control target key start
LH: loop header
LB: loop body
LE: loop exit
PB: predicated region body
PF: predicated region fallthrough
CT: control target
= control target key end

     0   :  { %vm29_vm0 = vcmask 261120   ;;  %v358_v50 = vmov 0.0   ;;  %vm197_vm9 = vcmask 523264   ;;  %vm296_vm15 = vcmask 257024   ;;  %s469_s1 = inlined_call_operand.vmem [shape: bf16[32,64], index: 1, kind: input, shape index: {}]   ;;  %s470_s2 = inlined_call_operand.vmem [shape: f32[1,64], index: 2, kind: input, shape index: {}]   ;;  %s471_s0 = inlined_call_operand.vmem [shape: bf16[16,32], index: 0, kind: input, shape index: {}]   ;;  %s472_s3 = inlined_call_operand.vmem [shape: bf16[64,32], index: 3, kind: input, shape index: {}]   ;;  %s473_s4 = inlined_call_operand.vmem [shape: f32[1,32], index: 4, kind: input, shape index: {}]   ;;  %s474_s5 = inlined_call_operand.vmem [shape: f32[1,32], index: 5, kind: input, shape index: {}]   ;;  %s475_s6 = inlined_call_operand.vmem [shape: f32[1,32], index: 6, kind: input, shape index: {}]   ;;  %s476_s7 = inlined_call_operand.vmem [shape: bf16[16,32], index: 7, kind: output, shape index: {}]  }
   0x1   :  { %v337_v0 = vld [vmem:[%s469_s1 + $0x8] sm:$0xff]  ;;  %v336_v1 = vld [vmem:[%s469_s1] sm:$0xff]  ;;  %v341_v22 = vld [vmem:[%s472_s3 + $0x18] sm:$0xff]  ;;  %30 = vst.msk [vmem:[#allocation2] sm:$0xff] %vm29_vm0, %v358_v50 }
   0x2   :  { %66 = vmatpush.bf16.msra.mxu0 %v337_v0  ;;  %v335_v2 = vld [vmem:[%s471_s0] sm:$0xff]  ;;  %205 = vmatpush.bf16.msra.mxu1 %v341_v22  ;;  %v340_v30 = vld [vmem:[%s472_s3 + $0x10] sm:$0xff]  ;;  %v339_v38 = vld [vmem:[%s472_s3 + $0x8] sm:$0xff]  ;;  %31 = vst.msk [vmem:[#allocation2 + $0x8] sm:$0xff] %vm29_vm0, %v358_v50 }
   0x3   :  { %v344_v3 = vld [vmem:[%s470_s2] ss:$0 sm:$0xff] }
   0x4   :  { %v338_v44 = vld [vmem:[%s472_s3] sm:$0xff] }
   0x6   :  { %67 = vmatpush.bf16.msra.mxu0 %v336_v1  ;;  %206 = vmatpush.bf16.msra.mxu1 %v340_v30 }
   0x9   :  { %315 = vmatmul.msk.bf16.vlgmr.msra.gmra.mxu0 %vm29_vm0, %v335_v2 }
   0xa   :  { %207 = vmatpush.bf16.msra.mxu1 %v339_v38 }
   0xe   :  { %208 = vmatpush.bf16.msra.mxu1 %v338_v44 }
  0x86   :  { %v69_v4 = vpop.f32.mrf.mxu0 }
  0x87   :  { %v413_v5 = vadd.f32 %v344_v3, %v69_v4 }
  0x89   :  { %v416_v6 = vmul.f32 0.70710677, %v413_v5 }
  0x8b   :  { %v78_v7 = vmul.f32 %v416_v6, %v416_v6 }
  0x8d   :  { %v79_v8 = vmin.f32 %v78_v7, 16.0 }
  0x8e   :  { %v71_v9 = vpop.f32.mrf.mxu0 }
  0x8f   :  { %v80_v10 = vmul.f32 2.1237322e-06, %v79_v8  ;;  %v91_v11 = vmul.f32 3.8918573e-05, %v79_v8  ;;  %v420_v12 = vadd.f32 %v344_v3, %v71_v9 }
  0x91   :  { %v81_v13 = vadd.f32 0.00028619796, %v80_v10  ;;  %v92_v14 = vadd.f32 0.001143296, %v91_v11  ;;  %v423_v15 = vmul.f32 0.70710677, %v420_v12 }
  0x93   :  { %v93_v16 = vmul.f32 %v92_v14, %v79_v8  ;;  %v118_v17 = vmul.f32 %v423_v15, %v423_v15  ;;  %v82_v18 = vmul.f32 %v81_v13, %v79_v8 }
  0x95   :  { %v94_v19 = vadd.f32 0.014752088, %v93_v16  ;;  %v119_v20 = vmin.f32 %v118_v17, 16.0  ;;  %v83_v25 = vadd.f32 0.0036580483, %v82_v18 }
  0x97   :  { %v95_v21 = vmul.f32 %v94_v19, %v79_v8  ;;  %v120_v23 = vmul.f32 2.1237322e-06, %v119_v20  ;;  %v131_v24 = vmul.f32 3.8918573e-05, %v119_v20  ;;  %v84_v33 = vmul.f32 %v83_v25, %v79_v8 }
  0x98   :  { %v74_v25 = vmul.f32 0.5, %v413_v5  ;;  %v345_v5 = vld [vmem:[%s473_s4] ss:$0 sm:$0xff] }
  0x99   :  { %v96_v26 = vadd.f32 0.112945676, %v95_v21  ;;  %v121_v27 = vadd.f32 0.00028619796, %v120_v23  ;;  %v132_v28 = vadd.f32 0.001143296, %v131_v24 }
  0x9a   :  { %v85_v40 = vadd.f32 0.05243302, %v84_v33 }
  0x9b   :  { %v97_v29 = vmul.f32 %v96_v26, %v79_v8  ;;  %v122_v31 = vmul.f32 %v121_v27, %v119_v20  ;;  %v133_v32 = vmul.f32 %v132_v28, %v119_v20  ;;  %v75_v26 = vmul.f32 0.5, %v420_v12 }
  0x9c   :  { %v86_v46 = vmul.f32 %v85_v40, %v79_v8 }
  0x9d   :  { %v98_v34 = vadd.f32 0.4994258, %v97_v29  ;;  %v123_v35 = vadd.f32 0.0036580483, %v122_v31  ;;  %v134_v36 = vadd.f32 0.014752088, %v133_v32 }
  0x9e   :  { %v87_v52 = vadd.f32 0.18741608, %v86_v46  ;;  %v162_v31 = vld [vmem:[#allocation2] sm:$0xff]  ;;  %v359_v46 = vmov 32.0  }
  0x9f   :  { %v99_v37 = vmul.f32 %v98_v34, %v79_v8  ;;  %v135_v39 = vmul.f32 %v134_v36, %v119_v20  ;;  %v124_v42 = vmul.f32 %v123_v35, %v119_v20  ;;  %v27_v34 = vld [vmem:[%s471_s0] sm:$0xff]  }
  0xa0   :  { %v88_v57 = vmul.f32 %v87_v52, %v79_v8  ;;  %v227_v36 = vunpack.c.l.bf16 %v27_v34 }
  0xa1   :  { %v100_v41 = vadd.f32 1.0, %v99_v37  ;;  %v136_v43 = vadd.f32 0.112945676, %v135_v39  ;;  %v125_v47 = vadd.f32 0.05243302, %v124_v42 }
  0xa2   :  { %v89_v63 = vadd.f32 1.1283791, %v88_v57 }
  0xa3   :  { %348 = vrcp.f32 %v100_v41  ;;  %v137_v45 = vmul.f32 %v136_v43, %v119_v20  ;;  %v126_v54 = vmul.f32 %v125_v47, %v119_v20  ;;  %v112_v59 = vand.u32 2147483648, %v100_v41 }
  0xa4   :  { %v110_v61 = vand.u32 2147483647, %v100_v41  ;;  %vm106_vm2 = vweird.f32 %v100_v41  ;;  %v90_v9 = vmul.f32 %v89_v63, %v416_v6 }
  0xa5   :  { %v138_v48 = vadd.f32 0.4994258, %v137_v45  ;;  %v127_v60 = vadd.f32 0.18741608, %v126_v54  ;;  %v113_v2 = vor.u32 1.1754944e-38, %v112_v59 }
  0xa6   :  { %vm111_vm4 = vcmp.eq.f32.partialorder %v110_v61, 8.507059e+37 }
  0xa7   :  { %v139_v49 = vmul.f32 %v138_v48, %v119_v20  ;;  %v128_v3 = vmul.f32 %v127_v60, %v119_v20 }
  0xa9   :  { %v349_v51 = vpop.eup %348  ;;  %v140_v55 = vadd.f32 1.0, %v139_v49  ;;  %v129_v8 = vadd.f32 1.1283791, %v128_v3 }
  0xaa   :  { %v102_v53 = vmul.f32 %v349_v51, %v100_v41  ;;  %vm107_vm1 = vweird.f32 %v349_v51  ;;  %v228_v41 = vunpack.c.h.bf16 %v27_v34 }
  0xab   :  { %350 = vrcp.f32 %v140_v55  ;;  %vm108_vm3 = vmor %vm106_vm2, %vm107_vm1  ;;  %v152_v11 = vand.u32 2147483648, %v140_v55  ;;  %v150_v16 = vand.u32 2147483647, %v140_v55  ;;  %vm146_vm6 = vweird.f32 %v140_v55 }
  0xac   :  { %v103_v56 = vsub.f32 1.0, %v102_v53  ;;  %v130_v21 = vmul.f32 %v129_v8, %v423_v15  ;;  %v163_v15 = vld [vmem:[#allocation2 + $0x8] sm:$0xff]  ;;  %352 = vrcp.f32 %v359_v46 }
  0xad   :  { %v153_v18 = vor.u32 1.1754944e-38, %v152_v11  ;;  %vm151_vm8 = vcmp.eq.f32.partialorder %v150_v16, 8.507059e+37 }
  0xae   :  { %v104_v58 = vmul.f32 %v349_v51, %v103_v56 }
  0xb0   :  { %v105_v62 = vadd.f32 %v349_v51, %v104_v58 }
  0xb1   :  { %v351_v0 = vpop.eup %350 }
  0xb2   :  { %v109_v1 = vsel %vm108_vm3, %v349_v51, %v105_v62  ;;  %v142_v4 = vmul.f32 %v351_v0, %v140_v55  ;;  %vm147_vm5 = vweird.f32 %v351_v0  ;;  %v353_v47 = vpop.eup %352 }
  0xb3   :  { %v114_v7 = vsel %vm111_vm4, %v113_v2, %v109_v1  ;;  %vm148_vm7 = vmor %vm146_vm6, %vm147_vm5  ;;  %v238_v48 = vmul.f32 32.0, %v353_v47  ;;  %vm242_vm10 = vweird.f32 %v353_v47 }
  0xb4   :  { %v143_v10 = vsub.f32 1.0, %v142_v4  ;;  %v115_v13 = vmul.f32 %v114_v7, %v90_v9 }
  0xb5   :  { %v239_v49 = vsub.f32 1.0, %v238_v48 }
  0xb6   :  { %v144_v14 = vmul.f32 %v351_v0, %v143_v10  ;;  %v316_v19 = vclamps-f32 %v115_v13, 1.0 }
  0xb7   :  { %v240_v50 = vmul.f32 %v353_v47, %v239_v49 }
  0xb8   :  { %v145_v17 = vadd.f32 %v351_v0, %v144_v14  ;;  %v158_v24 = vadd.f32 1.0, %v316_v19 }
  0xb9   :  { %v241_v51 = vadd.f32 %v353_v47, %v240_v50 }
  0xba   :  { %v149_v20 = vsel %vm148_vm7, %v351_v0, %v145_v17  ;;  %v160_v28 = vmul.f32 %v158_v24, %v74_v25  ;;  %v346_v17 = vld [vmem:[%s474_s5] ss:$0 sm:$0xff] }
  0xbb   :  { %v154_v22 = vsel %vm151_vm8, %v153_v18, %v149_v20  ;;  %v243_v52 = vsel %vm242_vm10, %v353_v47, %v241_v51 }
  0xbc   :  { %v155_v23 = vmul.f32 %v154_v22, %v130_v21  ;;  %v347_v21 = vld [vmem:[%s475_s6] ss:$0 sm:$0xff] }
  0xbe   :  { %v317_v6 = vclamps-f32 %v155_v23, 1.0 }
  0xc0   :  { %v159_v27 = vadd.f32 1.0, %v317_v6 }
  0xc2   :  { %v161_v29 = vmul.f32 %v159_v27, %v75_v26 }
  0xc4   :  { %v164_v30 = vpack.c.bf16 %v161_v29, %v160_v28 }
  0xc6   :  { %334 = vmatmul.msk.bf16.vlgmr.msra.gmra.mxu1 %vm197_vm9, %v164_v30 }
 0x143   :  { %v210_v32 = vpop.f32.mrf.mxu1 }
 0x144   :  { %v215_v33 = vadd.f32 %v210_v32, %v162_v31 }
 0x146   :  { %217 = vst.msk [vmem:[#allocation2] sm:$0xff] %vm29_vm0, %v215_v33 }
 0x14b   :  { %v212_v12 = vpop.f32.mrf.mxu1 }
 0x14c   :  { %v216_v35 = vadd.f32 %v212_v12, %v163_v15 }
 0x14d   :  { %v219_v37 = vld [vmem:[#allocation2] sm:$0xff] }
 0x14e   :  { %218 = vst.msk [vmem:[#allocation2 + $0x8] sm:$0xff] %vm29_vm0, %v216_v35  ;;  %v225_v38 = vadd.f32 %v345_v5, %v219_v37 }
 0x150   :  { %v229_v39 = vadd.f32 %v227_v36, %v225_v38 }
 0x152   :  { %v231_v40 = vsel %vm29_vm0, %v229_v39, 0.0 }
 0x153   :  { %232 = vadd.xlane.f32.xlu0 %v231_v40 }
 0x155   :  { %v220_v42 = vld [vmem:[#allocation2 + $0x8] sm:$0xff] }
 0x156   :  { %v226_v43 = vadd.f32 %v345_v5, %v220_v42 }
 0x158   :  { %v230_v44 = vadd.f32 %v228_v41, %v226_v43 }
 0x15a   :  { %v234_v45 = vsel %vm29_vm0, %v230_v44, 0.0 }
 0x15b   :  { %235 = vadd.xlane.f32.xlu0 %v234_v45 }
 0x1c6   :  { %v233_v53 = vpop.xlane.xlu0 %232 }
 0x1c7   :  { %v244_v54 = vmul.f32 %v243_v52, %v233_v53 }
 0x1c9   :  { %v246_v55 = vsub.f32 %v229_v39, %v244_v54 }
 0x1cb   :  { %v248_v56 = vmul.f32 %v246_v55, %v246_v55 }
 0x1cd   :  { %v250_v57 = vsel %vm29_vm0, %v248_v56, 0.0 }
 0x1ce   :  { %251 = vadd.xlane.f32.xlu1 %v250_v57  ;;  %v236_v58 = vpop.xlane.xlu0 %235 }
 0x1cf   :  { %v245_v59 = vmul.f32 %v243_v52, %v236_v58 }
 0x1d1   :  { %v247_v60 = vsub.f32 %v230_v44, %v245_v59 }
 0x1d3   :  { %v249_v61 = vmul.f32 %v247_v60, %v247_v60 }
 0x1d5   :  { %v253_v62 = vsel %vm29_vm0, %v249_v61, 0.0 }
 0x1d6   :  { %254 = vadd.xlane.f32.xlu1 %v253_v62 }
 0x241   :  { %v252_v63 = vpop.xlane.xlu1 %251 }
 0x242   :  { %v256_v0 = vmul.f32 %v252_v63, %v243_v52 }
 0x244   :  { %v258_v1 = vadd.f32 1e-12, %v256_v0 }
 0x246   :  { %354 = vrsqrt.f32 %v258_v1  ;;  %vm266_vm12 = vweird.f32 %v258_v1 }
 0x249   :  { %v255_v2 = vpop.xlane.xlu1 %254 }
 0x24a   :  { %v257_v3 = vmul.f32 %v255_v2, %v243_v52 }
 0x24c   :  { %v355_v4 = vpop.eup %354  ;;  %v259_v7 = vadd.f32 1e-12, %v257_v3 }
 0x24d   :  { %v261_v9 = vmul.f32 %v355_v4, %v258_v1  ;;  %vm267_vm11 = vweird.f32 %v355_v4 }
 0x24e   :  { %356 = vrsqrt.f32 %v259_v7  ;;  %vm268_vm13 = vmor %vm266_vm12, %vm267_vm11  ;;  %vm276_vm0 = vweird.f32 %v259_v7 }
 0x24f   :  { %v262_v10 = vmul.f32 %v355_v4, %v261_v9 }
 0x251   :  { %v263_v8 = vmul.f32 0.5, %v262_v10 }
 0x253   :  { %v264_v11 = vsub.f32 1.5, %v263_v8 }
 0x254   :  { %v357_v13 = vpop.eup %356 }
 0x255   :  { %v265_v14 = vmul.f32 %v355_v4, %v264_v11  ;;  %v271_v16 = vmul.f32 %v357_v13, %v259_v7  ;;  %vm277_vm14 = vweird.f32 %v357_v13 }
 0x256   :  { %vm278_vm1 = vmor %vm276_vm0, %vm277_vm14 }
 0x257   :  { %v269_v18 = vsel %vm268_vm13, %v355_v4, %v265_v14  ;;  %v272_v19 = vmul.f32 %v357_v13, %v271_v16 }
 0x258   :  { %v280_v20 = vmul.f32 %v269_v18, %v246_v55 }
 0x259   :  { %v273_v22 = vmul.f32 0.5, %v272_v19 }
 0x25a   :  { %v286_v23 = vmul.f32 %v346_v17, %v280_v20 }
 0x25b   :  { %v274_v24 = vsub.f32 1.5, %v273_v22 }
 0x25c   :  { %v292_v6 = vadd.f32 %v347_v21, %v286_v23 }
 0x25d   :  { %v275_v25 = vmul.f32 %v357_v13, %v274_v24 }
 0x25e   :  { %v294_v26 = vpack.c.bf16 %v292_v6, %v292_v6 }
 0x25f   :  { %v279_v27 = vsel %vm278_vm1, %v357_v13, %v275_v25 }
 0x260   :  { %297 = vst.msk [vmem:[%s476_s7] sm:$0xf] %vm296_vm15, %v294_v26  ;;  %v281_v28 = vmul.f32 %v279_v27, %v247_v60 }
 0x262   :  { %v287_v29 = vmul.f32 %v346_v17, %v281_v28 }
 0x264   :  { %v293_v30 = vadd.f32 %v347_v21, %v287_v29 }
 0x266   :  { %v295_v31 = vpack.c.bf16 %v293_v30, %v293_v30 }
 0x268   :  { %298 = vst.msk [vmem:[%s476_s7 + $0x4] sm:$0xf] %vm296_vm15, %v295_v31 }

// kernel: bert_embedding_forward.10
= control target key start
LH: loop header
LB: loop body
LE: loop exit
PB: predicated region body
PF: predicated region fallthrough
CT: control target
= control target key end

     0   :  { %s1076_s30 = smov 0   ;;  %s1078_s10 = smov 0   ;;  %s1174_s0 = inlined_call_operand.vmem [shape: f32[2,1,8], index: 0, kind: input, shape index: {}]   ;;  %s1175_s1 = inlined_call_operand.vmem [shape: bf16[2,8,32], index: 1, kind: input, shape index: {}]   ;;  %s1176_s2 = inlined_call_operand.vmem [shape: bf16[2,8,32], index: 2, kind: input, shape index: {}]   ;;  %s1177_s3 = inlined_call_operand.vmem [shape: bf16[2,8,32], index: 3, kind: input, shape index: {}]   ;;  %s1178_s4 = inlined_call_operand.vmem [shape: bf16[2,8,32], index: 4, kind: input, shape index: {}]   ;;  %s1179_s5 = inlined_call_operand.vmem [shape: bf16[32,32], index: 5, kind: input, shape index: {}]   ;;  %s1180_s6 = inlined_call_operand.vmem [shape: f32[1,32], index: 6, kind: input, shape index: {}]   ;;  %s1181_s7 = inlined_call_operand.vmem [shape: f32[1,32], index: 7, kind: input, shape index: {}]   ;;  %s1182_s8 = inlined_call_operand.vmem [shape: f32[1,32], index: 8, kind: input, shape index: {}]   ;;  %s1183_s9 = inlined_call_operand.vmem [shape: bf16[2,8,32], index: 9, kind: output, shape index: {}]  }
   0x1   :  { %s1080_s11 = smov 0  }
   0x2 LB: > { %s38_s12 = sadd.s32 1, %s1015_s10  ;;  %p921_p0 = scmp.ge.s32.totalorder %s1019_s11, 1  ;;  %s1019_s11 = sphi %s1080_s11, %s19_s11   ;;  %s1015_s10 = sphi %s1078_s10, %s1185_s10   ;;  %s1011_s30 = sphi %s1076_s30, %s1184_s30  }
   0x3   : > { %p40_p1 = scmp.ge.s32.totalorder %s38_s12, 2  ;;  %p367_p2 = scmp.lt.s32.totalorder %s1019_s11, 3 }
   0x5   : > { %s1187_s12 = smov (%p40_p1, %s38_s12), 0  ;;  %p368_p3 = pnand %p921_p0, %p367_p2 }
   0x6   : > { %p434_p4 = scmp.lt.s32.totalorder (!%p368_p3), %s1011_s30, 1  ;;  %s1021_s23 = smov (!%p368_p3), 112  }
   0x7   : > { %371 = sbr.rel (%p368_p3) target bundleno = 1154 (0x482), region = 56 }
   0xc   : > { %s1189_s30 = smov (!%p434_p4, %s1011_s30), 1  ;;  %vm485_vm0 = vcmask 130048   ;;  %vm480_vm1 = vcmask 7168   ;;  %v1022_v7 = vmov -inf   ;;  %vm516_vm2 = vcmask 64512  }
   0xd   : > { %s1094_s13 = sshll.u32 %s1189_s30, 2  ;;  %s439_s22 = scalar_lea.vmem %s1174_s0, %s1189_s30  ;;  %481 = vst.msk [vmem:[#allocation2] sm:$0xff] %vm480_vm1, %v1022_v7  ;;  %v1023_v16 = vmov 0   ;;  %vm551_vm3 = vcmask 1043456   ;;  %v1024_v31 = vmov 0.0   ;;  %vm740_vm4 = vcmask 261120  }
   0xe   : > { %s453_s16 = scalar_lea.vmem %s1176_s2, %s1094_s13  ;;  %s446_s19 = scalar_lea.vmem %s1175_s1, %s1094_s13  ;;  %482 = vst.msk [vmem:[#allocation2 + $0x8] sm:$0xff] %vm480_vm1, %v1022_v7  ;;  %v977_v11 = vld [vmem:[%s439_s22] ss:$0 sm:$0xff]  ;;  %974 = vset.pattern.permute.xlu2 %v1023_v16  ;;  %975 = vset.pattern.permute.xlu0 %v1023_v16  ;;  %vm781_vm9 = vcmask 257024  }
   0xf   : > { %v489_v0 = vld [vmem:[%s453_s16] sm:$0xf]  ;;  %976 = vset.pattern.permute.xlu1 %v1023_v16  ;;  %s460_s26 = scalar_lea.vmem %s1177_s3, %s1094_s13  ;;  %483 = vst.msk [vmem:[#allocation3] sm:$0xff] %vm480_vm1, %v1024_v31  ;;  %s467_s16 = scalar_lea.vmem %s1178_s4, %s1094_s13 }
  0x10   : > { %v500_v1 = vsel %vm485_vm0, %v489_v0, 0  ;;  %v577_v2 = vunpack.c.l.b16 %v489_v0  ;;  %v488_v3 = vld [vmem:[%s446_s19] sm:$0xf]  ;;  %486 = vst.msk [vmem:[#allocation4] sm:$0xff] %vm485_vm0, %v1024_v31  ;;  %s474_s25 = scalar_lea.vmem %s1183_s9, %s1094_s13 }
  0x11   : > { %509 = vmatpush.bf16.xpose.msra.mxu0 %v500_v1  ;;  %v572_v5 = vunpack.c.l.b16 %v488_v3  ;;  %v490_v26 = vld [vmem:[%s460_s26] sm:$0xf]  ;;  %487 = vst.msk [vmem:[#allocation4 + $0x8] sm:$0xff] %vm485_vm0, %v1024_v31  ;;  %v944_v1 = vld [vmem:[%s1179_s5 + $0x8] sm:$0xff] }
  0x12   : > { %v578_v4 = vpack.c.b16 %v577_v2, %v577_v2  ;;  %v553_v27 = vsel %vm551_vm3, %v490_v26, 0  ;;  %v635_v28 = vunpack.c.l.b16 %v490_v26  ;;  %484 = vst.msk [vmem:[#allocation3 + $0x8] sm:$0xff] %vm480_vm1, %v1024_v31  ;;  %v943_v0 = vld [vmem:[%s1179_s5] sm:$0xff] }
  0x13   : > { %v573_v6 = vpack.c.b16 %v572_v5, %v572_v5  ;;  %562 = vmatpush.bf16.msra.mxu1 %v553_v27 }
  0x14   : > { %579 = vrot.lane.b32.xlu0 %v578_v4, %s1021_s23  ;;  %v515_v17 = vld [vmem:[#allocation2] sm:$0xff]  ;;  %v636_v29 = vpack.c.b16 %v635_v28, %v635_v28 }
  0x15   : > { %v601_v38 = vld [vmem:[#allocation2 + $0x8] sm:$0xff] }
  0x16   : > { %v532_v46 = vld [vmem:[#allocation3] sm:$0xff] }
  0x17   : > { %v540_v53 = vld [vmem:[#allocation4] sm:$0xff]  ;;  %704 = vmatpush.bf16.msrb.mxu1 %v944_v1 }
  0x18   : > { %927 = vmatmul.msk.bf16.vlgmr.msra.gmra.mxu0 %vm485_vm0, %v488_v3 }
  0x19   : > { %v618_v2 = vld [vmem:[#allocation3 + $0x8] sm:$0xff] }
  0x1c   : > { %574 = vrot.lane.b32.xlu0 %v573_v6, %s1021_s23 }
  0x24   : > { %637 = vrot.lane.b32.xlu0 %v636_v29, %s1021_s23 }
  0x86   : > { %v580_v8 = vpop.permute.xlu0 %579 }
  0x87   : > { %v585_v9 = vsel %vm485_vm0, %v580_v8, 0 }
  0x88   : > { %594 = vmatpush.bf16.xpose.msra.mxu2 %v585_v9 }
  0x8e   : > { %v575_v10 = vpop.permute.xlu0 %574 }
  0x8f   : > { %929 = vmatmul.msk.bf16.vlgmr.msra.gmra.mxu2 %vm485_vm0, %v575_v10 }
  0x95   : > { %v511_v12 = vpop.f32.mrf.mxu0 }
  0x96   : > { %v512_v13 = vadd.f32 %v977_v11, %v511_v12  ;;  %v638_v44 = vpop.permute.xlu0 %637 }
  0x97   : > { %v643_v45 = vsel %vm551_vm3, %v638_v44, 0 }
  0x98   : > { %v517_v14 = vsel %vm516_vm2, %v512_v13, -inf  ;;  %652 = vmatpush.bf16.msra.mxu3 %v643_v45 }
  0x99   : > { %518 = vmax.xlane.f32.xlu1 %v517_v14 }
  0x9c   : > { %726 = vmatpush.bf16.msrb.mxu3 %v943_v0 }
  0x9d   : > { %v513_v15 = vpop.f32.mrf.mxu0 }
 0x10c   : > { %v519_v18 = vpop.xlane.xlu1 %518 }
 0x10d   : > { %v520_v19 = vmax.f32 %v515_v17, %v519_v18 }
 0x10f   : > { %v521_v20 = vsub.f32 %v515_v17, %v520_v19  ;;  %570 = vst.msk [vmem:[#allocation2] sm:$0xff] %vm480_vm1, %v520_v19  ;;  %526 = vperm.xlu2 %974, %v520_v19  }
 0x111   : > { %v522_v25 = vmul.f32 1.442695, %v521_v20 }
 0x112   : > { %v596_v21 = vpop.f32.mrf.mxu2 }
 0x113   : > { %v597_v22 = vadd.f32 %v977_v11, %v596_v21  ;;  %981 = vpow2.f32 %v522_v25  ;;  %v626_v11 = vld [vmem:[#allocation4 + $0x8] sm:$0xff]  ;;  %v978_v25 = vld [vmem:[%s1180_s6] ss:$0 sm:$0xff] }
 0x115   : > { %v602_v23 = vsel %vm516_vm2, %v597_v22, -inf }
 0x116   : > { %603 = vmax.xlane.f32.xlu1 %v602_v23 }
 0x119   : > { %v982_v30 = vpop.eup %981 }
 0x11a   : > { %v598_v24 = vpop.f32.mrf.mxu2  ;;  %543 = vperm.xlu0 %975, %v982_v30   ;;  %v533_v49 = vmul.f32 %v982_v30, %v532_v46 }
 0x11b   : > { %v737_v24 = vld [vmem:[%s467_s16] sm:$0xf] }
 0x11c   : > { %v738_v28 = vunpack.c.l.bf16 %v737_v24 }
 0x169   : > { %v527_v32 = vpop.permute.xlu2 %526 }
 0x16a   : > { %v529_v33 = vsub.f32 %v512_v13, %v527_v32 }
 0x16c   : > { %v530_v34 = vmul.f32 1.442695, %v529_v33  ;;  %v1025_v33 = vmov 32.0  }
 0x16e   : > { %983 = vpow2.f32 %v530_v34 }
 0x174   : > { %v984_v35 = vpop.eup %983 }
 0x175   : > { %v534_v36 = vsel %vm516_vm2, %v984_v35, 0.0  ;;  %v547_v37 = vpack.c.bf16 %v984_v35, %v984_v35 }
 0x176   : > { %535 = vadd.xlane.f32.xlu1 %v534_v36 }
 0x177   : > { %928 = vmatmul.msk.bf16.vlgmr.msra.gmra.mxu1 %vm516_vm2, %v547_v37 }
 0x189   : > { %v604_v39 = vpop.xlane.xlu1 %603 }
 0x18a   : > { %v605_v40 = vmax.f32 %v601_v38, %v604_v39 }
 0x18c   : > { %v606_v41 = vsub.f32 %v601_v38, %v605_v40  ;;  %660 = vst.msk [vmem:[#allocation2 + $0x8] sm:$0xff] %vm480_vm1, %v605_v40  ;;  %611 = vperm.xlu2 %974, %v605_v40   ;;  %v544_v54 = vpop.permute.xlu0 %543 }
 0x18d   : > { %v546_v56 = vmul.f32 %v544_v54, %v540_v53  ;;  %v979_v54 = vld [vmem:[%s1181_s7] ss:$0 sm:$0xff] }
 0x18e   : > { %v607_v42 = vmul.f32 1.442695, %v606_v41 }
 0x190   : > { %985 = vpow2.f32 %v607_v42 }
 0x196   : > { %v986_v43 = vpop.eup %985 }
 0x197   : > { %629 = vperm.xlu1 %976, %v986_v43   ;;  %v619_v3 = vmul.f32 %v986_v43, %v618_v2 }
 0x1e6   : > { %v612_v47 = vpop.permute.xlu2 %611 }
 0x1e7   : > { %v614_v48 = vsub.f32 %v597_v22, %v612_v47 }
 0x1e9   : > { %v615_v50 = vmul.f32 1.442695, %v614_v48  ;;  %v536_v51 = vpop.xlane.xlu1 %535 }
 0x1ea   : > { %v537_v52 = vadd.f32 %v536_v51, %v533_v49 }
 0x1eb   : > { %987 = vpow2.f32 %v615_v50 }
 0x1ec   : > { %539 = vst.msk [vmem:[#allocation3] sm:$0xff] %vm480_vm1, %v537_v52 }
 0x1f1   : > { %v988_v55 = vpop.eup %987 }
 0x1f2   : > { %v620_v57 = vsel %vm516_vm2, %v988_v55, 0.0  ;;  %v633_v58 = vpack.c.bf16 %v988_v55, %v988_v55 }
 0x1f3   : > { %621 = vadd.xlane.f32.xlu2 %v620_v57  ;;  %v665_v59 = vld [vmem:[#allocation3] sm:$0xff] }
 0x1f4   : > { %v564_v60 = vpop.f32.mrf.mxu1  ;;  %930 = vmatmul.msk.bf16.vlgmr.msra.gmra.mxu3 %vm516_vm2, %v633_v58  ;;  %989 = vrcp.f32 %v665_v59 }
 0x1f5   : > { %v568_v61 = vadd.f32 %v564_v60, %v546_v56  ;;  %v980_v56 = vld [vmem:[%s1182_s8] ss:$0 sm:$0xff] }
 0x1f7   : > { %569 = vst.msk [vmem:[#allocation4] sm:$0xff] %vm485_vm0, %v568_v61 }
 0x1fa   : > { %v990_v62 = vpop.eup %989 }
 0x1fb   : > { %669 = vperm.xlu0 %975, %v990_v62  }
 0x1fc   : > { %v566_v63 = vpop.f32.mrf.mxu1 }
 0x1fe   : > { %v664_v6 = vld [vmem:[#allocation4] sm:$0xff] }
 0x209   : > { %v630_v12 = vpop.permute.xlu1 %629 }
 0x20a   : > { %v632_v13 = vmul.f32 %v630_v12, %v626_v11 }
 0x266   : > { %v622_v4 = vpop.xlane.xlu2 %621 }
 0x267   : > { %v623_v5 = vadd.f32 %v622_v4, %v619_v3 }
 0x269   : > { %624 = vst.msk [vmem:[#allocation3 + $0x8] sm:$0xff] %vm480_vm1, %v623_v5 }
 0x26d   : > { %v670_v7 = vpop.permute.xlu0 %669 }
 0x26e   : > { %v672_v8 = vmul.f32 %v670_v7, %v664_v6 }
 0x270   : > { %v673_v9 = vpack.c.bf16 %v672_v8, %v672_v8  ;;  %v677_v10 = vld [vmem:[#allocation3 + $0x8] sm:$0xff] }
 0x271   : > { %991 = vrcp.f32 %v677_v10 }
 0x272   : > { %940 = vmatmul.msk.bf16.vlgmr.msrb.gmra.mxu3 %vm485_vm0, %v673_v9  ;;  %993 = vrcp.f32 %v1025_v33 }
 0x277   : > { %v992_v14 = vpop.eup %991  ;;  %v654_v15 = vpop.f32.mrf.mxu3 }
 0x278   : > { %v658_v16 = vadd.f32 %v654_v15, %v632_v13  ;;  %681 = vperm.xlu0 %975, %v992_v14   ;;  %v994_v34 = vpop.eup %993 }
 0x279   : > { %v745_v35 = vmul.f32 32.0, %v994_v34  ;;  %vm749_vm5 = vweird.f32 %v994_v34 }
 0x27a   : > { %659 = vst.msk [vmem:[#allocation4 + $0x8] sm:$0xff] %vm485_vm0, %v658_v16 }
 0x27b   : > { %v746_v36 = vsub.f32 1.0, %v745_v35 }
 0x27d   : > { %v747_v37 = vmul.f32 %v994_v34, %v746_v36 }
 0x27f   : > { %v656_v17 = vpop.f32.mrf.mxu3  ;;  %v748_v38 = vadd.f32 %v994_v34, %v747_v37 }
 0x281   : > { %v676_v19 = vld [vmem:[#allocation4 + $0x8] sm:$0xff]  ;;  %v750_v39 = vsel %vm749_vm5, %v994_v34, %v748_v38 }
 0x2ea   : > { %v682_v18 = vpop.permute.xlu0 %681 }
 0x2eb   : > { %v684_v20 = vmul.f32 %v682_v18, %v676_v19 }
 0x2ed   : > { %v685_v21 = vpack.c.bf16 %v684_v20, %v684_v20 }
 0x2ef   : > { %935 = vmatmul.msk.bf16.vlgmr.msrb.gmra.mxu1 %vm485_vm0, %v685_v21 }
 0x2f5   : > { %v728_v22 = vpop.f32.mrf.mxu3 }
 0x2fd   : > { %v730_v23 = vpop.f32.mrf.mxu3 }
 0x36c   : > { %v706_v26 = vpop.f32.mrf.mxu1 }
 0x36d   : > { %v729_v27 = vadd.f32 %v728_v22, %v706_v26 }
 0x36f   : > { %v736_v29 = vadd.f32 %v978_v25, %v729_v27 }
 0x371   : > { %v739_v30 = vadd.f32 %v738_v28, %v736_v29 }
 0x373   : > { %v741_v31 = vsel %vm740_vm4, %v739_v30, 0.0 }
 0x374   : > { %742 = vadd.xlane.f32.xlu1 %v741_v31  ;;  %v708_v32 = vpop.f32.mrf.mxu1 }
 0x3e7   : > { %v743_v40 = vpop.xlane.xlu1 %742 }
 0x3e8   : > { %v751_v41 = vmul.f32 %v750_v39, %v743_v40 }
 0x3ea   : > { %v752_v42 = vsub.f32 %v739_v30, %v751_v41 }
 0x3ec   : > { %v753_v43 = vmul.f32 %v752_v42, %v752_v42 }
 0x3ee   : > { %v754_v44 = vsel %vm740_vm4, %v753_v43, 0.0 }
 0x3ef   : > { %755 = vadd.xlane.f32.xlu0 %v754_v44 }
 0x462   : > { %v756_v45 = vpop.xlane.xlu0 %755 }
 0x463   : > { %v757_v46 = vmul.f32 %v756_v45, %v750_v39 }
 0x465   : > { %v758_v47 = vadd.f32 1e-12, %v757_v46 }
 0x467   : > { %995 = vrsqrt.f32 %v758_v47  ;;  %vm765_vm7 = vweird.f32 %v758_v47 }
 0x46d   : > { %v996_v48 = vpop.eup %995 }
 0x46e   : > { %v760_v49 = vmul.f32 %v996_v48, %v758_v47  ;;  %vm766_vm6 = vweird.f32 %v996_v48 }
 0x46f   : > { %vm767_vm8 = vmor %vm765_vm7, %vm766_vm6 }
 0x470   : > { %v761_v50 = vmul.f32 %v996_v48, %v760_v49 }
 0x472   : > { %v762_v51 = vmul.f32 0.5, %v761_v50 }
 0x474   : > { %v763_v52 = vsub.f32 1.5, %v762_v51 }
 0x476   : > { %v764_v53 = vmul.f32 %v996_v48, %v763_v52 }
 0x478   : > { %v768_v55 = vsel %vm767_vm8, %v996_v48, %v764_v53 }
 0x479   : > { %v769_v57 = vmul.f32 %v768_v55, %v752_v42 }
 0x47b   : > { %v774_v58 = vmul.f32 %v979_v54, %v769_v57 }
 0x47d   : > { %v779_v59 = vadd.f32 %v980_v56, %v774_v58 }
 0x47f   : > { %v780_v60 = vpack.c.bf16 %v779_v59, %v779_v59 }
 0x481   : > { %782 = vst.msk [vmem:[%s474_s25] sm:$0xf] %vm781_vm9, %v780_v60 }
 0x482 PF: > { %s19_s11 = sadd.s32 1, %s1019_s11   ;;  %s1184_s30 = smov %s1015_s10 }
 0x483   : > { %p16_p5 = scmp.ge.s32.totalorder %s19_s11, 4   ;;  %s1185_s10 = smov %s1187_s12 }
 0x485   :  { %18 = sbr.rel (!%p16_p5) target bundleno = 2 (0x2), region = 109 }

// kernel: bert_embedding_forward.15
= control target key start
LH: loop header
LB: loop body
LE: loop exit
PB: predicated region body
PF: predicated region fallthrough
CT: control target
= control target key end

     0   :  { %vm36_vm0 = vcmask 261120   ;;  %s108_s1 = inlined_call_operand.vmem [shape: bf16[32,32], index: 1, kind: input, shape index: {}]   ;;  %s109_s2 = inlined_call_operand.vmem [shape: f32[1,32], index: 2, kind: input, shape index: {}]   ;;  %s110_s0 = inlined_call_operand.vmem [shape: bf16[8,32], index: 0, kind: input, shape index: {}]   ;;  %s111_s3 = inlined_call_operand.vmem [shape: f32[8,32], index: 3, kind: output, shape index: {}]  }
   0x1   :  { %v69_v0 = vld [vmem:[%s108_s1 + $0x8] sm:$0xff]  ;;  %v68_v1 = vld [vmem:[%s108_s1] sm:$0xff] }
   0x2   :  { %46 = vmatpush.bf16.msra.mxu0 %v69_v0  ;;  %v15_v2 = vld [vmem:[%s110_s0] sm:$0xf] }
   0x3   :  { %v70_v3 = vld [vmem:[%s109_s2] ss:$0 sm:$0xff] }
   0x6   :  { %47 = vmatpush.bf16.msra.mxu0 %v68_v1 }
   0x9   :  { %67 = vmatmul.msk.bf16.vlgmr.msra.gmra.mxu0 %vm36_vm0, %v15_v2 }
  0x86   :  { %v49_v4 = vpop.f32.mrf.mxu0 }
  0x87   :  { %v50_v5 = vadd.f32 %v70_v3, %v49_v4 }
  0x89   :  { %71 = vtanh.f32 %v50_v5 }
  0x8e   :  { %v51_v6 = vpop.f32.mrf.mxu0 }
  0x8f   :  { %v72_v7 = vpop.eup %71 }
  0x90   :  { %54 = vst.msk [vmem:[%s111_s3] sm:$0xff] %vm36_vm0, %v72_v7 }

</bundles_post_ra>
